<compile_context>
chip_gen: v5e
topology: v5e:2x2
jax: 0.10.0
libtpu: 0.0.40
codegen_flags: <defaults>
</compile_context>

<pallas_src>
import functools
import math

import jax
import jax.numpy as jnp
from jax.experimental import pallas as pl
from jax.experimental.pallas import tpu as pltpu

LN_EPS = 1e-5  # PyTorch nn.LayerNorm default


def _round_up(x, m):
    return ((x + m - 1) // m) * m


def _layer_norm(x, g, b):
    mu = jnp.mean(x, axis=-1, keepdims=True)
    var = jnp.mean(jnp.square(x - mu), axis=-1, keepdims=True)
    return (x - mu) * jax.lax.rsqrt(var + LN_EPS) * g + b


def _gelu_exact(x):
    # nn.GELU() default (approximate='none')
    return 0.5 * x * (1.0 + jax.lax.erf(x * (1.0 / math.sqrt(2.0))))


# ---------------------------------------------------------------------------
# Kernel 1: token + position embedding (gather as one-hot matmul on the MXU).
# ---------------------------------------------------------------------------
def _embed_kernel(tok_ids_ref, pos_ids_ref, tok_tab_ref, pos_tab_ref, o_ref):
    n = tok_ids_ref.shape[0]
    vp = tok_tab_ref.shape[0]
    tp = pos_tab_ref.shape[0]
    tok_oh = (tok_ids_ref[...] ==
              jax.lax.broadcasted_iota(jnp.int32, (n, vp), 1)).astype(jnp.float32)
    pos_oh = (pos_ids_ref[...] ==
              jax.lax.broadcasted_iota(jnp.int32, (n, tp), 1)).astype(jnp.float32)
    tok_emb = jnp.dot(tok_oh, tok_tab_ref[...], preferred_element_type=jnp.float32)
    pos_emb = jnp.dot(pos_oh, pos_tab_ref[...], preferred_element_type=jnp.float32)
    # embedding dropout: p = 0.0 (eval) -> identity
    # TODO(synk): training-mode dropout (p>0) needs pltpu.prng_seed/prng_random_bits.
    o_ref[...] = tok_emb + pos_emb


def embed(idx, tok_table, pos_table):
    B, T = idx.shape
    V, C = tok_table.shape
    N = B * T
    Np = _round_up(N, 8)
    Vp = _round_up(V, 128)

    tok_ids = jnp.pad(idx.reshape(N, 1).astype(jnp.int32), ((0, Np - N), (0, 0)))
    pos_ids = jnp.pad(jnp.tile(jnp.arange(T, dtype=jnp.int32), B).reshape(N, 1),
                      ((0, Np - N), (0, 0)))
    tok_tab = jnp.pad(tok_table, ((0, Vp - V), (0, 0)))

    out = pl.pallas_call(
        _embed_kernel,
        out_shape=jax.ShapeDtypeStruct((Np, C), jnp.float32),
        compiler_params=pltpu.CompilerParams(vmem_limit_bytes=32 << 20),
    )(tok_ids, pos_ids, tok_tab, pos_table)
    return out[:N].reshape(B, T, C)


# ---------------------------------------------------------------------------
# Kernel 2: one fused transformer Block (LN1 -> causal attention -> residual
# -> LN2 -> MLP/GELU -> residual), grid over batch, weights resident in VMEM.
# ---------------------------------------------------------------------------
def _block_kernel(x_ref, ln1_g_ref, ln1_b_ref,
                  wq_ref, bq_ref, wk_ref, bk_ref, wv_ref, bv_ref,
                  wproj_ref, bproj_ref,
                  ln2_g_ref, ln2_b_ref,
                  w1_ref, b1_ref, w2_ref, b2_ref,
                  o_ref, *, n_head):
    x = x_ref[0]                                        # (T, C)
    T, C = x.shape
    hd = C // n_head
    scale = 1.0 / math.sqrt(hd)

    # ---- attention branch (pre-LN) ----
    xn = _layer_norm(x, ln1_g_ref[...], ln1_b_ref[...])
    row = jax.lax.broadcasted_iota(jnp.int32, (T, T), 0)
    col = jax.lax.broadcasted_iota(jnp.int32, (T, T), 1)
    causal = row >= col

    attn = jnp.zeros((T, C), jnp.float32)
    for h in range(n_head):                             # static unroll over heads
        qh = jnp.dot(xn, wq_ref[h], preferred_element_type=jnp.float32) + bq_ref[h]
        kh = jnp.dot(xn, wk_ref[h], preferred_element_type=jnp.float32) + bk_ref[h]
        vh = jnp.dot(xn, wv_ref[h], preferred_element_type=jnp.float32) + bv_ref[h]
        # q @ k^T via dot_general (no explicit transpose needed on the MXU)
        s = jax.lax.dot_general(qh, kh, (((1,), (1,)), ((), ())),
                                preferred_element_type=jnp.float32) * scale
        s = jnp.where(causal, s, -1e30)
        m = jnp.max(s, axis=-1, keepdims=True)
        p = jnp.exp(s - m)
        p = p / jnp.sum(p, axis=-1, keepdims=True)
        yh = jnp.dot(p, vh, preferred_element_type=jnp.float32)          # (T, hd)
        # per-head slice of the output projection: sum_h yh @ Wproj[h] == y @ Wproj
        attn = attn + jnp.dot(yh, wproj_ref[h], preferred_element_type=jnp.float32)
    # attn_dropout / resid_dropout: p = 0.0 -> identity
    x = x + attn + bproj_ref[...]

    # ---- MLP branch (pre-LN) ----
    xn2 = _layer_norm(x, ln2_g_ref[...], ln2_b_ref[...])
    hmid = jnp.dot(xn2, w1_ref[...], preferred_element_type=jnp.float32) + b1_ref[...]
    hmid = _gelu_exact(hmid)
    ff = jnp.dot(hmid, w2_ref[...], preferred_element_type=jnp.float32) + b2_ref[...]
    o_ref[0] = x + ff


def _resident_spec(shape):
    if len(shape) == 2:
        return pl.BlockSpec(shape, lambda b: (0, 0))
    return pl.BlockSpec(shape, lambda b: (0, 0, 0))


def transformer_block(x, blk_params, *, n_head):
    B, T, C = x.shape
    in_specs = [pl.BlockSpec((1, T, C), lambda b: (b, 0, 0))]
    in_specs += [_resident_spec(p.shape) for p in blk_params]

    flops_per_b = (2 * T * C * (3 * C)                    # q/k/v projections
                   + 4 * n_head * T * T * (C // n_head)   # scores + att @ v
                   + 2 * T * C * C                        # output projection
                   + 4 * T * C * (4 * C))                 # MLP matmuls
    cost = pl.CostEstimate(
        flops=B * flops_per_b,
        transcendentals=B * (n_head * T * T + T * 4 * C),
        bytes_accessed=2 * x.size * 4 + sum(int(p.size) for p in blk_params) * 4,
    )

    kernel = functools.partial(_block_kernel, n_head=n_head)
    return pl.pallas_call(
        kernel,
        out_shape=jax.ShapeDtypeStruct((B, T, C), jnp.float32),
        grid_spec=pltpu.PrefetchScalarGridSpec(
            num_scalar_prefetch=0,
            grid=(B,),
            in_specs=in_specs,
            out_specs=pl.BlockSpec((1, T, C), lambda b: (b, 0, 0)),
        ),
        compiler_params=pltpu.CompilerParams(
            dimension_semantics=("parallel",),
            vmem_limit_bytes=32 << 20,
        ),
        cost_estimate=cost,
    )(x, *blk_params)


# ---------------------------------------------------------------------------
# Kernel 3: final LayerNorm + lm_head (vocab padded to 128 for lane-dense vst).
# ---------------------------------------------------------------------------
def _head_kernel(x_ref, g_ref, b_ref, w_ref, bias_ref, o_ref):
    xn = _layer_norm(x_ref[...], g_ref[...], b_ref[...])
    o_ref[...] = (jnp.dot(xn, w_ref[...], preferred_element_type=jnp.float32)
                  + bias_ref[...])


def lm_head(x2d, lnf_g, lnf_b, w_head, b_head):
    N, C = x2d.shape
    V = w_head.shape[1]
    Np = _round_up(N, 8)
    Vp = _round_up(V, 128)
    xp = jnp.pad(x2d, ((0, Np - N), (0, 0)))
    wp = jnp.pad(w_head, ((0, 0), (0, Vp - V)))
    bp = jnp.pad(b_head, ((0, 0), (0, Vp - V)))
    out = pl.pallas_call(
        _head_kernel,
        out_shape=jax.ShapeDtypeStruct((Np, Vp), jnp.float32),
        compiler_params=pltpu.CompilerParams(vmem_limit_bytes=32 << 20),
    )(xp, lnf_g, lnf_b, wp, bp)
    return out[:N, :V]


# ---------------------------------------------------------------------------
# GPT forward (targets=None path: logits only).
# ---------------------------------------------------------------------------
def gpt_forward(idx, params, *, n_head):
    B, T = idx.shape
    x = embed(idx, params["tok_table"], params["pos_table"])
    for blk in params["blocks"]:
        x = transformer_block(x, blk, n_head=n_head)
    C = x.shape[-1]
    logits = lm_head(x.reshape(B * T, C), params["lnf_g"], params["lnf_b"],
                     params["w_head"], params["b_head"])
    return logits.reshape(B, T, -1)
    # TODO(synk): cross_entropy loss (targets path) and generate()'s multinomial
    # sampling loop are host-level control flow, left outside the kernels.


# ---------------------------------------------------------------------------
# Parameter construction + pure-JAX reference.
# ---------------------------------------------------------------------------
def _linear(key, fan_in, fan_out):
    kw, kb = jax.random.split(key)
    bound = 1.0 / math.sqrt(fan_in)
    w = jax.random.uniform(kw, (fan_in, fan_out), jnp.float32, -bound, bound)
    b = jax.random.uniform(kb, (1, fan_out), jnp.float32, -bound, bound)
    return w, b


def _block_params(key, n_embd, n_head):
    hd = n_embd // n_head
    k1, k2, k3, k4 = jax.random.split(key, 4)
    wqkv, bqkv = _linear(k1, n_embd, 3 * n_embd)       # c_attn (stored as (in,out))
    wproj, bproj = _linear(k2, n_embd, n_embd)         # c_proj
    w1, b1 = _linear(k3, n_embd, 4 * n_embd)           # ffwd_linear
    w2, b2 = _linear(k4, 4 * n_embd, n_embd)           # proj_linear
    ln1_g = jnp.ones((1, n_embd), jnp.float32)
    ln1_b = jnp.zeros((1, n_embd), jnp.float32)
    ln2_g = jnp.ones((1, n_embd), jnp.float32)
    ln2_b = jnp.zeros((1, n_embd), jnp.float32)

    # Pre-split q/k/v and proj weights per head for the kernel (no in-kernel
    # lane-dim slicing / reshapes).
    def split_heads_w(w):   # (C, C) -> (nh, C, hd)
        return w.reshape(n_embd, n_head, hd).transpose(1, 0, 2)

    def split_heads_b(b):   # (1, C) -> (nh, 1, hd)
        return b.reshape(1, n_head, hd).transpose(1, 0, 2)

    wq = split_heads_w(wqkv[:, :n_embd])
    wk = split_heads_w(wqkv[:, n_embd:2 * n_embd])
    wv = split_heads_w(wqkv[:, 2 * n_embd:])
    bq = split_heads_b(bqkv[:, :n_embd])
    bk = split_heads_b(bqkv[:, n_embd:2 * n_embd])
    bv = split_heads_b(bqkv[:, 2 * n_embd:])
    wproj_h = wproj.reshape(n_head, hd, n_embd)        # rows of head h

    kernel_blk = (ln1_g, ln1_b, wq, bq, wk, bk, wv, bv, wproj_h, bproj,
                  ln2_g, ln2_b, w1, b1, w2, b2)
    ref_blk = (ln1_g, ln1_b, wqkv, bqkv, wproj, bproj,
               ln2_g, ln2_b, w1, b1, w2, b2)
    return kernel_blk, ref_blk


def _ref_ln(x, g, b):
    mu = jnp.mean(x, axis=-1, keepdims=True)
    var = jnp.mean(jnp.square(x - mu), axis=-1, keepdims=True)
    return (x - mu) / jnp.sqrt(var + LN_EPS) * g + b


def ref_gpt_forward(idx, ref_params, *, n_head):
    B, T = idx.shape
    x = ref_params["tok_table"][idx] + ref_params["pos_table"][jnp.arange(T)]
    for (ln1_g, ln1_b, wqkv, bqkv, wproj, bproj,
         ln2_g, ln2_b, w1, b1, w2, b2) in ref_params["blocks"]:
        C = x.shape[-1]
        hd = C // n_head
        xn = _ref_ln(x, ln1_g, ln1_b)
        qkv = xn @ wqkv + bqkv
        q, k, v = jnp.split(qkv, 3, axis=-1)
        q = q.reshape(B, T, n_head, hd).transpose(0, 2, 1, 3)
        k = k.reshape(B, T, n_head, hd).transpose(0, 2, 1, 3)
        v = v.reshape(B, T, n_head, hd).transpose(0, 2, 1, 3)
        att = (q @ jnp.swapaxes(k, -1, -2)) / math.sqrt(hd)
        mask = jnp.tril(jnp.ones((T, T), dtype=bool))
        att = jnp.where(mask, att, -jnp.inf)
        att = jax.nn.softmax(att, axis=-1)
        y = (att @ v).transpose(0, 2, 1, 3).reshape(B, T, C)
        x = x + y @ wproj + bproj
        xn2 = _ref_ln(x, ln2_g, ln2_b)
        h = xn2 @ w1 + b1
        h = 0.5 * h * (1.0 + jax.lax.erf(h / math.sqrt(2.0)))
        x = x + h @ w2 + b2
    x = _ref_ln(x, ref_params["lnf_g"], ref_params["lnf_b"])
    return x @ ref_params["w_head"] + ref_params["b_head"]


if __name__ == "__main__":
    # small GPT config: vocab=65, block_size=16, n_embd=32, n_head=4, n_layer=2,
    # dropout=0.0, bias=True.  Input idx: (B=2, T=8) int tokens.
    vocab_size, block_size = 65, 16
    n_embd, n_head, n_layer = 32, 4, 2
    B, T = 2, 8

    root = jax.random.PRNGKey(0)
    k_idx, k_tok, k_pos, k_head, *k_blocks = jax.random.split(root, 4 + n_layer)

    idx = jax.random.randint(k_idx, (B, T), 0, vocab_size, dtype=jnp.int32)
    tok_table = 0.02 * jax.random.normal(k_tok, (vocab_size, n_embd), jnp.float32)
    pos_table = 0.02 * jax.random.normal(k_pos, (block_size, n_embd), jnp.float32)
    w_head, b_head = _linear(k_head, n_embd, vocab_size)
    lnf_g = jnp.ones((1, n_embd), jnp.float32)
    lnf_b = jnp.zeros((1, n_embd), jnp.float32)

    kernel_blocks, ref_blocks = [], []
    for kb in k_blocks:
        kblk, rblk = _block_params(kb, n_embd, n_head)
        kernel_blocks.append(kblk)
        ref_blocks.append(rblk)

    params = dict(tok_table=tok_table, pos_table=pos_table, blocks=kernel_blocks,
                  lnf_g=lnf_g, lnf_b=lnf_b, w_head=w_head, b_head=b_head)
    ref_params = dict(tok_table=tok_table, pos_table=pos_table, blocks=ref_blocks,
                      lnf_g=lnf_g, lnf_b=lnf_b, w_head=w_head, b_head=b_head)

    fwd = jax.jit(functools.partial(gpt_forward, n_head=n_head))
    logits = fwd(idx, params)
    jax.block_until_ready(logits)
    assert logits.shape == (B, T, vocab_size), logits.shape

    ref = ref_gpt_forward(idx, ref_params, n_head=n_head)
    max_err = float(jnp.max(jnp.abs(logits - ref)))
    assert jnp.allclose(logits, ref, atol=1e-2, rtol=1e-2), max_err

    print("KERNEL_OK")
</pallas_src>

<mosaic_0001>
module attributes {stable_mosaic.version = 11 : i64} {
  func.func @_embed_kernel(%arg0: memref<16x1xi32, #tpu.memory_space<vmem>>, %arg1: memref<16x1xi32, #tpu.memory_space<vmem>>, %arg2: memref<128x32xf32, #tpu.memory_space<vmem>>, %arg3: memref<16x32xf32, #tpu.memory_space<vmem>>, %arg4: memref<16x32xf32, #tpu.memory_space<vmem>>) attributes {dimension_semantics = [], scalar_prefetch = 0 : i64, scratch_operands = 0 : i64, tpu.core_type = #tpu.core_type<tc>} {
    %c0 = arith.constant 0 : index
    %c0_0 = arith.constant 0 : index
    %0 = vector.load %arg0[%c0, %c0_0] : memref<16x1xi32, #tpu.memory_space<vmem>>, vector<16x1xi32>
    %1 = tpu.iota {dimensions = array<i32: 1>} : vector<16x128xi32>
    %2 = vector.broadcast %0 : vector<16x1xi32> to vector<16x128xi32>
    %3 = arith.cmpi eq, %2, %1 : vector<16x128xi32>
    %4 = arith.extui %3 : vector<16x128xi1> to vector<16x128xi32>
    %5 = arith.sitofp %4 : vector<16x128xi32> to vector<16x128xf32>
    %c0_1 = arith.constant 0 : index
    %c0_2 = arith.constant 0 : index
    %6 = vector.load %arg1[%c0_1, %c0_2] : memref<16x1xi32, #tpu.memory_space<vmem>>, vector<16x1xi32>
    %7 = tpu.iota {dimensions = array<i32: 1>} : vector<16x16xi32>
    %8 = vector.broadcast %6 : vector<16x1xi32> to vector<16x16xi32>
    %9 = arith.cmpi eq, %8, %7 : vector<16x16xi32>
    %10 = arith.extui %9 : vector<16x16xi1> to vector<16x16xi32>
    %11 = arith.sitofp %10 : vector<16x16xi32> to vector<16x16xf32>
    %c0_3 = arith.constant 0 : index
    %c0_4 = arith.constant 0 : index
    %12 = vector.load %arg2[%c0_3, %c0_4] : memref<128x32xf32, #tpu.memory_space<vmem>>, vector<128x32xf32>
    %cst = arith.constant dense<0.000000e+00> : vector<16x32xf32>
    %13 = tpu.matmul %5, %12, %cst {dimension_numbers = #tpu.dot_dimension_numbers<[1], [0], [0], [1], [0, 0, 1, 1], [], []>} : vector<16x128xf32>, vector<128x32xf32>, vector<16x32xf32> -> vector<16x32xf32>
    %c0_5 = arith.constant 0 : index
    %c0_6 = arith.constant 0 : index
    %14 = vector.load %arg3[%c0_5, %c0_6] : memref<16x32xf32, #tpu.memory_space<vmem>>, vector<16x32xf32>
    %cst_7 = arith.constant dense<0.000000e+00> : vector<16x32xf32>
    %15 = tpu.matmul %11, %14, %cst_7 {dimension_numbers = #tpu.dot_dimension_numbers<[1], [0], [0], [1], [0, 0, 1, 1], [], []>} : vector<16x16xf32>, vector<16x32xf32>, vector<16x32xf32> -> vector<16x32xf32>
    %16 = arith.addf %13, %15 : vector<16x32xf32>
    %c0_8 = arith.constant 0 : index
    %c0_9 = arith.constant 0 : index
    %17 = vector.load %arg4[%c0_8, %c0_9] : memref<16x32xf32, #tpu.memory_space<vmem>>, vector<16x32xf32>
    tpu.vector_store %arg4[%c0_8, %c0_9], %16 {strides = array<i32>} : memref<16x32xf32, #tpu.memory_space<vmem>>, vector<16x32xf32>,
    return
  }
}

module attributes {stable_mosaic.version = 11 : i64} {
  func.func @_head_kernel(%arg0: memref<16x32xf32, #tpu.memory_space<vmem>>, %arg1: memref<1x32xf32, #tpu.memory_space<vmem>>, %arg2: memref<1x32xf32, #tpu.memory_space<vmem>>, %arg3: memref<32x128xf32, #tpu.memory_space<vmem>>, %arg4: memref<1x128xf32, #tpu.memory_space<vmem>>, %arg5: memref<16x128xf32, #tpu.memory_space<vmem>>) attributes {dimension_semantics = [], scalar_prefetch = 0 : i64, scratch_operands = 0 : i64, tpu.core_type = #tpu.core_type<tc>} {
    %c0 = arith.constant 0 : index
    %c0_0 = arith.constant 0 : index
    %0 = vector.load %arg0[%c0, %c0_0] : memref<16x32xf32, #tpu.memory_space<vmem>>, vector<16x32xf32>
    %c0_1 = arith.constant 0 : index
    %c0_2 = arith.constant 0 : index
    %1 = vector.load %arg1[%c0_1, %c0_2] : memref<1x32xf32, #tpu.memory_space<vmem>>, vector<1x32xf32>
    %c0_3 = arith.constant 0 : index
    %c0_4 = arith.constant 0 : index
    %2 = vector.load %arg2[%c0_3, %c0_4] : memref<1x32xf32, #tpu.memory_space<vmem>>, vector<1x32xf32>
    %cst = arith.constant dense<0.000000e+00> : vector<16xf32>
    %3 = vector.multi_reduction <add>, %0, %cst [1] : vector<16x32xf32> to vector<16xf32>
    %4 = vector.shape_cast %3 : vector<16xf32> to vector<16x1xf32>
    %cst_5 = arith.constant 3.200000e+01 : f32
    %5 = vector.broadcast %cst_5 : f32 to vector<16x1xf32>
    %6 = arith.divf %4, %5 : vector<16x1xf32>
    %7 = vector.broadcast %6 : vector<16x1xf32> to vector<16x32xf32>
    %8 = arith.subf %0, %7 : vector<16x32xf32>
    %9 = arith.mulf %8, %8 : vector<16x32xf32>
    %cst_6 = arith.constant dense<0.000000e+00> : vector<16xf32>
    %10 = vector.multi_reduction <add>, %9, %cst_6 [1] : vector<16x32xf32> to vector<16xf32>
    %11 = vector.shape_cast %10 : vector<16xf32> to vector<16x1xf32>
    %cst_7 = arith.constant 3.200000e+01 : f32
    %12 = vector.broadcast %cst_7 : f32 to vector<16x1xf32>
    %13 = arith.divf %11, %12 : vector<16x1xf32>
    %14 = vector.broadcast %6 : vector<16x1xf32> to vector<16x32xf32>
    %15 = arith.subf %0, %14 : vector<16x32xf32>
    %cst_8 = arith.constant 9.99999974E-6 : f32
    %16 = vector.broadcast %cst_8 : f32 to vector<16x1xf32>
    %17 = arith.addf %13, %16 : vector<16x1xf32>
    %18 = math.rsqrt %17 : vector<16x1xf32>
    %19 = vector.broadcast %18 : vector<16x1xf32> to vector<16x32xf32>
    %20 = arith.mulf %15, %19 : vector<16x32xf32>
    %21 = vector.broadcast %1 : vector<1x32xf32> to vector<16x32xf32>
    %22 = arith.mulf %20, %21 : vector<16x32xf32>
    %23 = vector.broadcast %2 : vector<1x32xf32> to vector<16x32xf32>
    %24 = arith.addf %22, %23 : vector<16x32xf32>
    %c0_9 = arith.constant 0 : index
    %c0_10 = arith.constant 0 : index
    %25 = vector.load %arg3[%c0_9, %c0_10] : memref<32x128xf32, #tpu.memory_space<vmem>>, vector<32x128xf32>
    %cst_11 = arith.constant dense<0.000000e+00> : vector<16x128xf32>
    %26 = tpu.matmul %24, %25, %cst_11 {dimension_numbers = #tpu.dot_dimension_numbers<[1], [0], [0], [1], [0, 0, 1, 1], [], []>} : vector<16x32xf32>, vector<32x128xf32>, vector<16x128xf32> -> vector<16x128xf32>
    %c0_12 = arith.constant 0 : index
    %c0_13 = arith.constant 0 : index
    %27 = vector.load %arg4[%c0_12, %c0_13] : memref<1x128xf32, #tpu.memory_space<vmem>>, vector<1x128xf32>
    %28 = vector.broadcast %27 : vector<1x128xf32> to vector<16x128xf32>
    %29 = arith.addf %26, %28 : vector<16x128xf32>
    %c0_14 = arith.constant 0 : index
    %c0_15 = arith.constant 0 : index
    %30 = vector.load %arg5[%c0_14, %c0_15] : memref<16x128xf32, #tpu.memory_space<vmem>>, vector<16x128xf32>
    tpu.vector_store %arg5[%c0_14, %c0_15], %29 {strides = array<i32>} : memref<16x128xf32, #tpu.memory_space<vmem>>, vector<16x128xf32>,
    return
  }
}

module attributes {stable_mosaic.version = 11 : i64} {
  func.func @_block_kernel(%arg0: i32, %arg1: memref<1x8x32xf32, #tpu.memory_space<vmem>>, %arg2: memref<1x32xf32, #tpu.memory_space<vmem>>, %arg3: memref<1x32xf32, #tpu.memory_space<vmem>>, %arg4: memref<4x32x8xf32, #tpu.memory_space<vmem>>, %arg5: memref<4x1x8xf32, #tpu.memory_space<vmem>>, %arg6: memref<4x32x8xf32, #tpu.memory_space<vmem>>, %arg7: memref<4x1x8xf32, #tpu.memory_space<vmem>>, %arg8: memref<4x32x8xf32, #tpu.memory_space<vmem>>, %arg9: memref<4x1x8xf32, #tpu.memory_space<vmem>>, %arg10: memref<4x8x32xf32, #tpu.memory_space<vmem>>, %arg11: memref<1x32xf32, #tpu.memory_space<vmem>>, %arg12: memref<1x32xf32, #tpu.memory_space<vmem>>, %arg13: memref<1x32xf32, #tpu.memory_space<vmem>>, %arg14: memref<32x128xf32, #tpu.memory_space<vmem>>, %arg15: memref<1x128xf32, #tpu.memory_space<vmem>>, %arg16: memref<128x32xf32, #tpu.memory_space<vmem>>, %arg17: memref<1x32xf32, #tpu.memory_space<vmem>>, %arg18: memref<1x8x32xf32, #tpu.memory_space<vmem>>) attributes {dimension_semantics = [#tpu.dimension_semantics<parallel>], iteration_bounds = array<i64: 2>, scalar_prefetch = 0 : i64, scratch_operands = 0 : i64, tpu.core_type = #tpu.core_type<tc>, window_params = [{transform_indices = @transform_0, window_bounds = array<i64: 1, 8, 32>}, {pipeline_mode = #tpu.pipeline_mode<synchronous>, transform_indices = @transform_1, window_bounds = array<i64: 1, 32>}, {pipeline_mode = #tpu.pipeline_mode<synchronous>, transform_indices = @transform_2, window_bounds = array<i64: 1, 32>}, {pipeline_mode = #tpu.pipeline_mode<synchronous>, transform_indices = @transform_3, window_bounds = array<i64: 4, 32, 8>}, {pipeline_mode = #tpu.pipeline_mode<synchronous>, transform_indices = @transform_4, window_bounds = array<i64: 4, 1, 8>}, {pipeline_mode = #tpu.pipeline_mode<synchronous>, transform_indices = @transform_5, window_bounds = array<i64: 4, 32, 8>}, {pipeline_mode = #tpu.pipeline_mode<synchronous>, transform_indices = @transform_6, window_bounds = array<i64: 4, 1, 8>}, {pipeline_mode = #tpu.pipeline_mode<synchronous>, transform_indices = @transform_7, window_bounds = array<i64: 4, 32, 8>}, {pipeline_mode = #tpu.pipeline_mode<synchronous>, transform_indices = @transform_8, window_bounds = array<i64: 4, 1, 8>}, {pipeline_mode = #tpu.pipeline_mode<synchronous>, transform_indices = @transform_9, window_bounds = array<i64: 4, 8, 32>}, {pipeline_mode = #tpu.pipeline_mode<synchronous>, transform_indices = @transform_10, window_bounds = array<i64: 1, 32>}, {pipeline_mode = #tpu.pipeline_mode<synchronous>, transform_indices = @transform_11, window_bounds = array<i64: 1, 32>}, {pipeline_mode = #tpu.pipeline_mode<synchronous>, transform_indices = @transform_12, window_bounds = array<i64: 1, 32>}, {pipeline_mode = #tpu.pipeline_mode<synchronous>, transform_indices = @transform_13, window_bounds = array<i64: 32, 128>}, {pipeline_mode = #tpu.pipeline_mode<synchronous>, transform_indices = @transform_14, window_bounds = array<i64: 1, 128>}, {pipeline_mode = #tpu.pipeline_mode<synchronous>, transform_indices = @transform_15, window_bounds = array<i64: 128, 32>}, {pipeline_mode = #tpu.pipeline_mode<synchronous>, transform_indices = @transform_16, window_bounds = array<i64: 1, 32>}, {transform_indices = @transform_17, window_bounds = array<i64: 1, 8, 32>}]} {
    %c0 = arith.constant 0 : index
    %c0_0 = arith.constant 0 : index
    %c0_1 = arith.constant 0 : index
    %0 = vector.load %arg1[%c0, %c0_0, %c0_1] : memref<1x8x32xf32, #tpu.memory_space<vmem>>, vector<1x8x32xf32>
    %1 = vector.shape_cast %0 : vector<1x8x32xf32> to vector<8x32xf32>
    %c0_2 = arith.constant 0 : index
    %c0_3 = arith.constant 0 : index
    %2 = vector.load %arg2[%c0_2, %c0_3] : memref<1x32xf32, #tpu.memory_space<vmem>>, vector<1x32xf32>
    %c0_4 = arith.constant 0 : index
    %c0_5 = arith.constant 0 : index
    %3 = vector.load %arg3[%c0_4, %c0_5] : memref<1x32xf32, #tpu.memory_space<vmem>>, vector<1x32xf32>
    %cst = arith.constant dense<0.000000e+00> : vector<8xf32>
    %4 = vector.multi_reduction <add>, %1, %cst [1] : vector<8x32xf32> to vector<8xf32>
    %5 = vector.shape_cast %4 : vector<8xf32> to vector<8x1xf32>
    %cst_6 = arith.constant 3.200000e+01 : f32
    %6 = vector.broadcast %cst_6 : f32 to vector<8x1xf32>
    %7 = arith.divf %5, %6 : vector<8x1xf32>
    %8 = vector.broadcast %7 : vector<8x1xf32> to vector<8x32xf32>
    %9 = arith.subf %1, %8 : vector<8x32xf32>
    %10 = arith.mulf %9, %9 : vector<8x32xf32>
    %cst_7 = arith.constant dense<0.000000e+00> : vector<8xf32>
    %11 = vector.multi_reduction <add>, %10, %cst_7 [1] : vector<8x32xf32> to vector<8xf32>
    %12 = vector.shape_cast %11 : vector<8xf32> to vector<8x1xf32>
    %cst_8 = arith.constant 3.200000e+01 : f32
    %13 = vector.broadcast %cst_8 : f32 to vector<8x1xf32>
    %14 = arith.divf %12, %13 : vector<8x1xf32>
    %15 = vector.broadcast %7 : vector<8x1xf32> to vector<8x32xf32>
    %16 = arith.subf %1, %15 : vector<8x32xf32>
    %cst_9 = arith.constant 9.99999974E-6 : f32
    %17 = vector.broadcast %cst_9 : f32 to vector<8x1xf32>
    %18 = arith.addf %14, %17 : vector<8x1xf32>
    %19 = math.rsqrt %18 : vector<8x1xf32>
    %20 = vector.broadcast %19 : vector<8x1xf32> to vector<8x32xf32>
    %21 = arith.mulf %16, %20 : vector<8x32xf32>
    %22 = vector.broadcast %2 : vector<1x32xf32> to vector<8x32xf32>
    %23 = arith.mulf %21, %22 : vector<8x32xf32>
    %24 = vector.broadcast %3 : vector<1x32xf32> to vector<8x32xf32>
    %25 = arith.addf %23, %24 : vector<8x32xf32>
    %26 = tpu.iota {dimensions = array<i32: 0>} : vector<8x8xi32>
    %27 = tpu.iota {dimensions = array<i32: 1>} : vector<8x8xi32>
    %28 = arith.cmpi sge, %26, %27 : vector<8x8xi32>
    %cst_10 = arith.constant 0.000000e+00 : f32
    %29 = vector.broadcast %cst_10 : f32 to vector<8x32xf32>
    %c0_11 = arith.constant 0 : index
    %c0_12 = arith.constant 0 : index
    %c0_13 = arith.constant 0 : index
    %30 = vector.load %arg4[%c0_11, %c0_12, %c0_13] : memref<4x32x8xf32, #tpu.memory_space<vmem>>, vector<1x32x8xf32>
    %31 = vector.shape_cast %30 : vector<1x32x8xf32> to vector<32x8xf32>
    %cst_14 = arith.constant dense<0.000000e+00> : vector<8x8xf32>
    %32 = tpu.matmul %25, %31, %cst_14 {dimension_numbers = #tpu.dot_dimension_numbers<[1], [0], [0], [1], [0, 0, 1, 1], [], []>} : vector<8x32xf32>, vector<32x8xf32>, vector<8x8xf32> -> vector<8x8xf32>
    %c0_15 = arith.constant 0 : index
    %c0_16 = arith.constant 0 : index
    %c0_17 = arith.constant 0 : index
    %33 = vector.load %arg5[%c0_15, %c0_16, %c0_17] : memref<4x1x8xf32, #tpu.memory_space<vmem>>, vector<1x1x8xf32>
    %34 = vector.shape_cast %33 : vector<1x1x8xf32> to vector<1x8xf32>
    %35 = vector.broadcast %34 : vector<1x8xf32> to vector<8x8xf32>
    %36 = arith.addf %32, %35 : vector<8x8xf32>
    %c0_18 = arith.constant 0 : index
    %c0_19 = arith.constant 0 : index
    %c0_20 = arith.constant 0 : index
    %37 = vector.load %arg6[%c0_18, %c0_19, %c0_20] : memref<4x32x8xf32, #tpu.memory_space<vmem>>, vector<1x32x8xf32>
    %38 = vector.shape_cast %37 : vector<1x32x8xf32> to vector<32x8xf32>
    %cst_21 = arith.constant dense<0.000000e+00> : vector<8x8xf32>
    %39 = tpu.matmul %25, %38, %cst_21 {dimension_numbers = #tpu.dot_dimension_numbers<[1], [0], [0], [1], [0, 0, 1, 1], [], []>} : vector<8x32xf32>, vector<32x8xf32>, vector<8x8xf32> -> vector<8x8xf32>
    %c0_22 = arith.constant 0 : index
    %c0_23 = arith.constant 0 : index
    %c0_24 = arith.constant 0 : index
    %40 = vector.load %arg7[%c0_22, %c0_23, %c0_24] : memref<4x1x8xf32, #tpu.memory_space<vmem>>, vector<1x1x8xf32>
    %41 = vector.shape_cast %40 : vector<1x1x8xf32> to vector<1x8xf32>
    %42 = vector.broadcast %41 : vector<1x8xf32> to vector<8x8xf32>
    %43 = arith.addf %39, %42 : vector<8x8xf32>
    %c0_25 = arith.constant 0 : index
    %c0_26 = arith.constant 0 : index
    %c0_27 = arith.constant 0 : index
    %44 = vector.load %arg8[%c0_25, %c0_26, %c0_27] : memref<4x32x8xf32, #tpu.memory_space<vmem>>, vector<1x32x8xf32>
    %45 = vector.shape_cast %44 : vector<1x32x8xf32> to vector<32x8xf32>
    %cst_28 = arith.constant dense<0.000000e+00> : vector<8x8xf32>
    %46 = tpu.matmul %25, %45, %cst_28 {dimension_numbers = #tpu.dot_dimension_numbers<[1], [0], [0], [1], [0, 0, 1, 1], [], []>} : vector<8x32xf32>, vector<32x8xf32>, vector<8x8xf32> -> vector<8x8xf32>
    %c0_29 = arith.constant 0 : index
    %c0_30 = arith.constant 0 : index
    %c0_31 = arith.constant 0 : index
    %47 = vector.load %arg9[%c0_29, %c0_30, %c0_31] : memref<4x1x8xf32, #tpu.memory_space<vmem>>, vector<1x1x8xf32>
    %48 = vector.shape_cast %47 : vector<1x1x8xf32> to vector<1x8xf32>
    %49 = vector.broadcast %48 : vector<1x8xf32> to vector<8x8xf32>
    %50 = arith.addf %46, %49 : vector<8x8xf32>
    %cst_32 = arith.constant dense<0.000000e+00> : vector<8x8xf32>
    %51 = tpu.matmul %36, %43, %cst_32 {dimension_numbers = #tpu.dot_dimension_numbers<[1], [1], [0], [0], [0, 0, 1, 0], [], []>} : vector<8x8xf32>, vector<8x8xf32>, vector<8x8xf32> -> vector<8x8xf32>
    %cst_33 = arith.constant 0.353553385 : f32
    %52 = vector.broadcast %cst_33 : f32 to vector<8x8xf32>
    %53 = arith.mulf %51, %52 : vector<8x8xf32>
    %cst_34 = arith.constant -1.000000e+30 : f32
    %54 = vector.broadcast %cst_34 : f32 to vector<8x8xf32>
    %55 = arith.select %28, %53, %54 : vector<8x8xi1>, vector<8x8xf32>
    %cst_35 = arith.constant dense<0xFF800000> : vector<8xf32>
    %56 = vector.multi_reduction <maximumf>, %55, %cst_35 [1] : vector<8x8xf32> to vector<8xf32>
    %57 = vector.shape_cast %56 : vector<8xf32> to vector<8x1xf32>
    %58 = vector.broadcast %57 : vector<8x1xf32> to vector<8x8xf32>
    %59 = arith.subf %55, %58 : vector<8x8xf32>
    %60 = math.exp %59 : vector<8x8xf32>
    %cst_36 = arith.constant dense<0.000000e+00> : vector<8xf32>
    %61 = vector.multi_reduction <add>, %60, %cst_36 [1] : vector<8x8xf32> to vector<8xf32>
    %62 = vector.shape_cast %61 : vector<8xf32> to vector<8x1xf32>
    %63 = vector.broadcast %62 : vector<8x1xf32> to vector<8x8xf32>
    %64 = arith.divf %60, %63 : vector<8x8xf32>
    %cst_37 = arith.constant dense<0.000000e+00> : vector<8x8xf32>
    %65 = tpu.matmul %64, %50, %cst_37 {dimension_numbers = #tpu.dot_dimension_numbers<[1], [0], [0], [1], [0, 0, 1, 1], [], []>} : vector<8x8xf32>, vector<8x8xf32>, vector<8x8xf32> -> vector<8x8xf32>
    %c0_38 = arith.constant 0 : index
    %c0_39 = arith.constant 0 : index
    %c0_40 = arith.constant 0 : index
    %66 = vector.load %arg10[%c0_38, %c0_39, %c0_40] : memref<4x8x32xf32, #tpu.memory_space<vmem>>, vector<1x8x32xf32>
    %67 = vector.shape_cast %66 : vector<1x8x32xf32> to vector<8x32xf32>
    %cst_41 = arith.constant dense<0.000000e+00> : vector<8x32xf32>
    %68 = tpu.matmul %65, %67, %cst_41 {dimension_numbers = #tpu.dot_dimension_numbers<[1], [0], [0], [1], [0, 0, 1, 1], [], []>} : vector<8x8xf32>, vector<8x32xf32>, vector<8x32xf32> -> vector<8x32xf32>
    %69 = arith.addf %29, %68 : vector<8x32xf32>
    %c1 = arith.constant 1 : index
    %c0_42 = arith.constant 0 : index
    %c0_43 = arith.constant 0 : index
    %70 = vector.load %arg4[%c1, %c0_42, %c0_43] : memref<4x32x8xf32, #tpu.memory_space<vmem>>, vector<1x32x8xf32>
    %71 = vector.shape_cast %70 : vector<1x32x8xf32> to vector<32x8xf32>
    %cst_44 = arith.constant dense<0.000000e+00> : vector<8x8xf32>
    %72 = tpu.matmul %25, %71, %cst_44 {dimension_numbers = #tpu.dot_dimension_numbers<[1], [0], [0], [1], [0, 0, 1, 1], [], []>} : vector<8x32xf32>, vector<32x8xf32>, vector<8x8xf32> -> vector<8x8xf32>
    %c1_45 = arith.constant 1 : index
    %c0_46 = arith.constant 0 : index
    %c0_47 = arith.constant 0 : index
    %73 = vector.load %arg5[%c1_45, %c0_46, %c0_47] : memref<4x1x8xf32, #tpu.memory_space<vmem>>, vector<1x1x8xf32>
    %74 = vector.shape_cast %73 : vector<1x1x8xf32> to vector<1x8xf32>
    %75 = vector.broadcast %74 : vector<1x8xf32> to vector<8x8xf32>
    %76 = arith.addf %72, %75 : vector<8x8xf32>
    %c1_48 = arith.constant 1 : index
    %c0_49 = arith.constant 0 : index
    %c0_50 = arith.constant 0 : index
    %77 = vector.load %arg6[%c1_48, %c0_49, %c0_50] : memref<4x32x8xf32, #tpu.memory_space<vmem>>, vector<1x32x8xf32>
    %78 = vector.shape_cast %77 : vector<1x32x8xf32> to vector<32x8xf32>
    %cst_51 = arith.constant dense<0.000000e+00> : vector<8x8xf32>
    %79 = tpu.matmul %25, %78, %cst_51 {dimension_numbers = #tpu.dot_dimension_numbers<[1], [0], [0], [1], [0, 0, 1, 1], [], []>} : vector<8x32xf32>, vector<32x8xf32>, vector<8x8xf32> -> vector<8x8xf32>
    %c1_52 = arith.constant 1 : index
    %c0_53 = arith.constant 0 : index
    %c0_54 = arith.constant 0 : index
    %80 = vector.load %arg7[%c1_52, %c0_53, %c0_54] : memref<4x1x8xf32, #tpu.memory_space<vmem>>, vector<1x1x8xf32>
    %81 = vector.shape_cast %80 : vector<1x1x8xf32> to vector<1x8xf32>
    %82 = vector.broadcast %81 : vector<1x8xf32> to vector<8x8xf32>
    %83 = arith.addf %79, %82 : vector<8x8xf32>
    %c1_55 = arith.constant 1 : index
    %c0_56 = arith.constant 0 : index
    %c0_57 = arith.constant 0 : index
    %84 = vector.load %arg8[%c1_55, %c0_56, %c0_57] : memref<4x32x8xf32, #tpu.memory_space<vmem>>, vector<1x32x8xf32>
    %85 = vector.shape_cast %84 : vector<1x32x8xf32> to vector<32x8xf32>
    %cst_58 = arith.constant dense<0.000000e+00> : vector<8x8xf32>
    %86 = tpu.matmul %25, %85, %cst_58 {dimension_numbers = #tpu.dot_dimension_numbers<[1], [0], [0], [1], [0, 0, 1, 1], [], []>} : vector<8x32xf32>, vector<32x8xf32>, vector<8x8xf32> -> vector<8x8xf32>
    %c1_59 = arith.constant 1 : index
    %c0_60 = arith.constant 0 : index
    %c0_61 = arith.constant 0 : index
    %87 = vector.load %arg9[%c1_59, %c0_60, %c0_61] : memref<4x1x8xf32, #tpu.memory_space<vmem>>, vector<1x1x8xf32>
    %88 = vector.shape_cast %87 : vector<1x1x8xf32> to vector<1x8xf32>
    %89 = vector.broadcast %88 : vector<1x8xf32> to vector<8x8xf32>
    %90 = arith.addf %86, %89 : vector<8x8xf32>
    %cst_62 = arith.constant dense<0.000000e+00> : vector<8x8xf32>
    %91 = tpu.matmul %76, %83, %cst_62 {dimension_numbers = #tpu.dot_dimension_numbers<[1], [1], [0], [0], [0, 0, 1, 0], [], []>} : vector<8x8xf32>, vector<8x8xf32>, vector<8x8xf32> -> vector<8x8xf32>
    %cst_63 = arith.constant 0.353553385 : f32
    %92 = vector.broadcast %cst_63 : f32 to vector<8x8xf32>
    %93 = arith.mulf %91, %92 : vector<8x8xf32>
    %cst_64 = arith.constant -1.000000e+30 : f32
    %94 = vector.broadcast %cst_64 : f32 to vector<8x8xf32>
    %95 = arith.select %28, %93, %94 : vector<8x8xi1>, vector<8x8xf32>
    %cst_65 = arith.constant dense<0xFF800000> : vector<8xf32>
    %96 = vector.multi_reduction <maximumf>, %95, %cst_65 [1] : vector<8x8xf32> to vector<8xf32>
    %97 = vector.shape_cast %96 : vector<8xf32> to vector<8x1xf32>
    %98 = vector.broadcast %97 : vector<8x1xf32> to vector<8x8xf32>
    %99 = arith.subf %95, %98 : vector<8x8xf32>
    %100 = math.exp %99 : vector<8x8xf32>
    %cst_66 = arith.constant dense<0.000000e+00> : vector<8xf32>
    %101 = vector.multi_reduction <add>, %100, %cst_66 [1] : vector<8x8xf32> to vector<8xf32>
    %102 = vector.shape_cast %101 : vector<8xf32> to vector<8x1xf32>
    %103 = vector.broadcast %102 : vector<8x1xf32> to vector<8x8xf32>
    %104 = arith.divf %100, %103 : vector<8x8xf32>
    %cst_67 = arith.constant dense<0.000000e+00> : vector<8x8xf32>
    %105 = tpu.matmul %104, %90, %cst_67 {dimension_numbers = #tpu.dot_dimension_numbers<[1], [0], [0], [1], [0, 0, 1, 1], [], []>} : vector<8x8xf32>, vector<8x8xf32>, vector<8x8xf32> -> vector<8x8xf32>
    %c1_68 = arith.constant 1 : index
    %c0_69 = arith.constant 0 : index
    %c0_70 = arith.constant 0 : index
    %106 = vector.load %arg10[%c1_68, %c0_69, %c0_70] : memref<4x8x32xf32, #tpu.memory_space<vmem>>, vector<1x8x32xf32>
    %107 = vector.shape_cast %106 : vector<1x8x32xf32> to vector<8x32xf32>
    %cst_71 = arith.constant dense<0.000000e+00> : vector<8x32xf32>
    %108 = tpu.matmul %105, %107, %cst_71 {dimension_numbers = #tpu.dot_dimension_numbers<[1], [0], [0], [1], [0, 0, 1, 1], [], []>} : vector<8x8xf32>, vector<8x32xf32>, vector<8x32xf32> -> vector<8x32xf32>
    %109 = arith.addf %69, %108 : vector<8x32xf32>
    %c2 = arith.constant 2 : index
    %c0_72 = arith.constant 0 : index
    %c0_73 = arith.constant 0 : index
    %110 = vector.load %arg4[%c2, %c0_72, %c0_73] : memref<4x32x8xf32, #tpu.memory_space<vmem>>, vector<1x32x8xf32>
    %111 = vector.shape_cast %110 : vector<1x32x8xf32> to vector<32x8xf32>
    %cst_74 = arith.constant dense<0.000000e+00> : vector<8x8xf32>
    %112 = tpu.matmul %25, %111, %cst_74 {dimension_numbers = #tpu.dot_dimension_numbers<[1], [0], [0], [1], [0, 0, 1, 1], [], []>} : vector<8x32xf32>, vector<32x8xf32>, vector<8x8xf32> -> vector<8x8xf32>
    %c2_75 = arith.constant 2 : index
    %c0_76 = arith.constant 0 : index
    %c0_77 = arith.constant 0 : index
    %113 = vector.load %arg5[%c2_75, %c0_76, %c0_77] : memref<4x1x8xf32, #tpu.memory_space<vmem>>, vector<1x1x8xf32>
    %114 = vector.shape_cast %113 : vector<1x1x8xf32> to vector<1x8xf32>
    %115 = vector.broadcast %114 : vector<1x8xf32> to vector<8x8xf32>
    %116 = arith.addf %112, %115 : vector<8x8xf32>
    %c2_78 = arith.constant 2 : index
    %c0_79 = arith.constant 0 : index
    %c0_80 = arith.constant 0 : index
    %117 = vector.load %arg6[%c2_78, %c0_79, %c0_80] : memref<4x32x8xf32, #tpu.memory_space<vmem>>, vector<1x32x8xf32>
    %118 = vector.shape_cast %117 : vector<1x32x8xf32> to vector<32x8xf32>
    %cst_81 = arith.constant dense<0.000000e+00> : vector<8x8xf32>
    %119 = tpu.matmul %25, %118, %cst_81 {dimension_numbers = #tpu.dot_dimension_numbers<[1], [0], [0], [1], [0, 0, 1, 1], [], []>} : vector<8x32xf32>, vector<32x8xf32>, vector<8x8xf32> -> vector<8x8xf32>
    %c2_82 = arith.constant 2 : index
    %c0_83 = arith.constant 0 : index
    %c0_84 = arith.constant 0 : index
    %120 = vector.load %arg7[%c2_82, %c0_83, %c0_84] : memref<4x1x8xf32, #tpu.memory_space<vmem>>, vector<1x1x8xf32>
    %121 = vector.shape_cast %120 : vector<1x1x8xf32> to vector<1x8xf32>
    %122 = vector.broadcast %121 : vector<1x8xf32> to vector<8x8xf32>
    %123 = arith.addf %119, %122 : vector<8x8xf32>
    %c2_85 = arith.constant 2 : index
    %c0_86 = arith.constant 0 : index
    %c0_87 = arith.constant 0 : index
    %124 = vector.load %arg8[%c2_85, %c0_86, %c0_87] : memref<4x32x8xf32, #tpu.memory_space<vmem>>, vector<1x32x8xf32>
    %125 = vector.shape_cast %124 : vector<1x32x8xf32> to vector<32x8xf32>
    %cst_88 = arith.constant dense<0.000000e+00> : vector<8x8xf32>
    %126 = tpu.matmul %25, %125, %cst_88 {dimension_numbers = #tpu.dot_dimension_numbers<[1], [0], [0], [1], [0, 0, 1, 1], [], []>} : vector<8x32xf32>, vector<32x8xf32>, vector<8x8xf32> -> vector<8x8xf32>
    %c2_89 = arith.constant 2 : index
    %c0_90 = arith.constant 0 : index
    %c0_91 = arith.constant 0 : index
    %127 = vector.load %arg9[%c2_89, %c0_90, %c0_91] : memref<4x1x8xf32, #tpu.memory_space<vmem>>, vector<1x1x8xf32>
    %128 = vector.shape_cast %127 : vector<1x1x8xf32> to vector<1x8xf32>
    %129 = vector.broadcast %128 : vector<1x8xf32> to vector<8x8xf32>
    %130 = arith.addf %126, %129 : vector<8x8xf32>
    %cst_92 = arith.constant dense<0.000000e+00> : vector<8x8xf32>
    %131 = tpu.matmul %116, %123, %cst_92 {dimension_numbers = #tpu.dot_dimension_numbers<[1], [1], [0], [0], [0, 0, 1, 0], [], []>} : vector<8x8xf32>, vector<8x8xf32>, vector<8x8xf32> -> vector<8x8xf32>
    %cst_93 = arith.constant 0.353553385 : f32
    %132 = vector.broadcast %cst_93 : f32 to vector<8x8xf32>
    %133 = arith.mulf %131, %132 : vector<8x8xf32>
    %cst_94 = arith.constant -1.000000e+30 : f32
    %134 = vector.broadcast %cst_94 : f32 to vector<8x8xf32>
    %135 = arith.select %28, %133, %134 : vector<8x8xi1>, vector<8x8xf32>
    %cst_95 = arith.constant dense<0xFF800000> : vector<8xf32>
    %136 = vector.multi_reduction <maximumf>, %135, %cst_95 [1] : vector<8x8xf32> to vector<8xf32>
    %137 = vector.shape_cast %136 : vector<8xf32> to vector<8x1xf32>
    %138 = vector.broadcast %137 : vector<8x1xf32> to vector<8x8xf32>
    %139 = arith.subf %135, %138 : vector<8x8xf32>
    %140 = math.exp %139 : vector<8x8xf32>
    %cst_96 = arith.constant dense<0.000000e+00> : vector<8xf32>
    %141 = vector.multi_reduction <add>, %140, %cst_96 [1] : vector<8x8xf32> to vector<8xf32>
    %142 = vector.shape_cast %141 : vector<8xf32> to vector<8x1xf32>
    %143 = vector.broadcast %142 : vector<8x1xf32> to vector<8x8xf32>
    %144 = arith.divf %140, %143 : vector<8x8xf32>
    %cst_97 = arith.constant dense<0.000000e+00> : vector<8x8xf32>
    %145 = tpu.matmul %144, %130, %cst_97 {dimension_numbers = #tpu.dot_dimension_numbers<[1], [0], [0], [1], [0, 0, 1, 1], [], []>} : vector<8x8xf32>, vector<8x8xf32>, vector<8x8xf32> -> vector<8x8xf32>
    %c2_98 = arith.constant 2 : index
    %c0_99 = arith.constant 0 : index
    %c0_100 = arith.constant 0 : index
    %146 = vector.load %arg10[%c2_98, %c0_99, %c0_100] : memref<4x8x32xf32, #tpu.memory_space<vmem>>, vector<1x8x32xf32>
    %147 = vector.shape_cast %146 : vector<1x8x32xf32> to vector<8x32xf32>
    %cst_101 = arith.constant dense<0.000000e+00> : vector<8x32xf32>
    %148 = tpu.matmul %145, %147, %cst_101 {dimension_numbers = #tpu.dot_dimension_numbers<[1], [0], [0], [1], [0, 0, 1, 1], [], []>} : vector<8x8xf32>, vector<8x32xf32>, vector<8x32xf32> -> vector<8x32xf32>
    %149 = arith.addf %109, %148 : vector<8x32xf32>
    %c3 = arith.constant 3 : index
    %c0_102 = arith.constant 0 : index
    %c0_103 = arith.constant 0 : index
    %150 = vector.load %arg4[%c3, %c0_102, %c0_103] : memref<4x32x8xf32, #tpu.memory_space<vmem>>, vector<1x32x8xf32>
    %151 = vector.shape_cast %150 : vector<1x32x8xf32> to vector<32x8xf32>
    %cst_104 = arith.constant dense<0.000000e+00> : vector<8x8xf32>
    %152 = tpu.matmul %25, %151, %cst_104 {dimension_numbers = #tpu.dot_dimension_numbers<[1], [0], [0], [1], [0, 0, 1, 1], [], []>} : vector<8x32xf32>, vector<32x8xf32>, vector<8x8xf32> -> vector<8x8xf32>
    %c3_105 = arith.constant 3 : index
    %c0_106 = arith.constant 0 : index
    %c0_107 = arith.constant 0 : index
    %153 = vector.load %arg5[%c3_105, %c0_106, %c0_107] : memref<4x1x8xf32, #tpu.memory_space<vmem>>, vector<1x1x8xf32>
    %154 = vector.shape_cast %153 : vector<1x1x8xf32> to vector<1x8xf32>
    %155 = vector.broadcast %154 : vector<1x8xf32> to vector<8x8xf32>
    %156 = arith.addf %152, %155 : vector<8x8xf32>
    %c3_108 = arith.constant 3 : index
    %c0_109 = arith.constant 0 : index
    %c0_110 = arith.constant 0 : index
    %157 = vector.load %arg6[%c3_108, %c0_109, %c0_110] : memref<4x32x8xf32, #tpu.memory_space<vmem>>, vector<1x32x8xf32>
    %158 = vector.shape_cast %157 : vector<1x32x8xf32> to vector<32x8xf32>
    %cst_111 = arith.constant dense<0.000000e+00> : vector<8x8xf32>
    %159 = tpu.matmul %25, %158, %cst_111 {dimension_numbers = #tpu.dot_dimension_numbers<[1], [0], [0], [1], [0, 0, 1, 1], [], []>} : vector<8x32xf32>, vector<32x8xf32>, vector<8x8xf32> -> vector<8x8xf32>
    %c3_112 = arith.constant 3 : index
    %c0_113 = arith.constant 0 : index
    %c0_114 = arith.constant 0 : index
    %160 = vector.load %arg7[%c3_112, %c0_113, %c0_114] : memref<4x1x8xf32, #tpu.memory_space<vmem>>, vector<1x1x8xf32>
    %161 = vector.shape_cast %160 : vector<1x1x8xf32> to vector<1x8xf32>
    %162 = vector.broadcast %161 : vector<1x8xf32> to vector<8x8xf32>
    %163 = arith.addf %159, %162 : vector<8x8xf32>
    %c3_115 = arith.constant 3 : index
    %c0_116 = arith.constant 0 : index
    %c0_117 = arith.constant 0 : index
    %164 = vector.load %arg8[%c3_115, %c0_116, %c0_117] : memref<4x32x8xf32, #tpu.memory_space<vmem>>, vector<1x32x8xf32>
    %165 = vector.shape_cast %164 : vector<1x32x8xf32> to vector<32x8xf32>
    %cst_118 = arith.constant dense<0.000000e+00> : vector<8x8xf32>
    %166 = tpu.matmul %25, %165, %cst_118 {dimension_numbers = #tpu.dot_dimension_numbers<[1], [0], [0], [1], [0, 0, 1, 1], [], []>} : vector<8x32xf32>, vector<32x8xf32>, vector<8x8xf32> -> vector<8x8xf32>
    %c3_119 = arith.constant 3 : index
    %c0_120 = arith.constant 0 : index
    %c0_121 = arith.constant 0 : index
    %167 = vector.load %arg9[%c3_119, %c0_120, %c0_121] : memref<4x1x8xf32, #tpu.memory_space<vmem>>, vector<1x1x8xf32>
    %168 = vector.shape_cast %167 : vector<1x1x8xf32> to vector<1x8xf32>
    %169 = vector.broadcast %168 : vector<1x8xf32> to vector<8x8xf32>
    %170 = arith.addf %166, %169 : vector<8x8xf32>
    %cst_122 = arith.constant dense<0.000000e+00> : vector<8x8xf32>
    %171 = tpu.matmul %156, %163, %cst_122 {dimension_numbers = #tpu.dot_dimension_numbers<[1], [1], [0], [0], [0, 0, 1, 0], [], []>} : vector<8x8xf32>, vector<8x8xf32>, vector<8x8xf32> -> vector<8x8xf32>
    %cst_123 = arith.constant 0.353553385 : f32
    %172 = vector.broadcast %cst_123 : f32 to vector<8x8xf32>
    %173 = arith.mulf %171, %172 : vector<8x8xf32>
    %cst_124 = arith.constant -1.000000e+30 : f32
    %174 = vector.broadcast %cst_124 : f32 to vector<8x8xf32>
    %175 = arith.select %28, %173, %174 : vector<8x8xi1>, vector<8x8xf32>
    %cst_125 = arith.constant dense<0xFF800000> : vector<8xf32>
    %176 = vector.multi_reduction <maximumf>, %175, %cst_125 [1] : vector<8x8xf32> to vector<8xf32>
    %177 = vector.shape_cast %176 : vector<8xf32> to vector<8x1xf32>
    %178 = vector.broadcast %177 : vector<8x1xf32> to vector<8x8xf32>
    %179 = arith.subf %175, %178 : vector<8x8xf32>
    %180 = math.exp %179 : vector<8x8xf32>
    %cst_126 = arith.constant dense<0.000000e+00> : vector<8xf32>
    %181 = vector.multi_reduction <add>, %180, %cst_126 [1] : vector<8x8xf32> to vector<8xf32>
    %182 = vector.shape_cast %181 : vector<8xf32> to vector<8x1xf32>
    %183 = vector.broadcast %182 : vector<8x1xf32> to vector<8x8xf32>
    %184 = arith.divf %180, %183 : vector<8x8xf32>
    %cst_127 = arith.constant dense<0.000000e+00> : vector<8x8xf32>
    %185 = tpu.matmul %184, %170, %cst_127 {dimension_numbers = #tpu.dot_dimension_numbers<[1], [0], [0], [1], [0, 0, 1, 1], [], []>} : vector<8x8xf32>, vector<8x8xf32>, vector<8x8xf32> -> vector<8x8xf32>
    %c3_128 = arith.constant 3 : index
    %c0_129 = arith.constant 0 : index
    %c0_130 = arith.constant 0 : index
    %186 = vector.load %arg10[%c3_128, %c0_129, %c0_130] : memref<4x8x32xf32, #tpu.memory_space<vmem>>, vector<1x8x32xf32>
    %187 = vector.shape_cast %186 : vector<1x8x32xf32> to vector<8x32xf32>
    %cst_131 = arith.constant dense<0.000000e+00> : vector<8x32xf32>
    %188 = tpu.matmul %185, %187, %cst_131 {dimension_numbers = #tpu.dot_dimension_numbers<[1], [0], [0], [1], [0, 0, 1, 1], [], []>} : vector<8x8xf32>, vector<8x32xf32>, vector<8x32xf32> -> vector<8x32xf32>
    %189 = arith.addf %149, %188 : vector<8x32xf32>
    %190 = arith.addf %1, %189 : vector<8x32xf32>
    %c0_132 = arith.constant 0 : index
    %c0_133 = arith.constant 0 : index
    %191 = vector.load %arg11[%c0_132, %c0_133] : memref<1x32xf32, #tpu.memory_space<vmem>>, vector<1x32xf32>
    %192 = vector.broadcast %191 : vector<1x32xf32> to vector<8x32xf32>
    %193 = arith.addf %190, %192 : vector<8x32xf32>
    %c0_134 = arith.constant 0 : index
    %c0_135 = arith.constant 0 : index
    %194 = vector.load %arg12[%c0_134, %c0_135] : memref<1x32xf32, #tpu.memory_space<vmem>>, vector<1x32xf32>
    %c0_136 = arith.constant 0 : index
    %c0_137 = arith.constant 0 : index
    %195 = vector.load %arg13[%c0_136, %c0_137] : memref<1x32xf32, #tpu.memory_space<vmem>>, vector<1x32xf32>
    %cst_138 = arith.constant dense<0.000000e+00> : vector<8xf32>
    %196 = vector.multi_reduction <add>, %193, %cst_138 [1] : vector<8x32xf32> to vector<8xf32>
    %197 = vector.shape_cast %196 : vector<8xf32> to vector<8x1xf32>
    %cst_139 = arith.constant 3.200000e+01 : f32
    %198 = vector.broadcast %cst_139 : f32 to vector<8x1xf32>
    %199 = arith.divf %197, %198 : vector<8x1xf32>
    %200 = vector.broadcast %199 : vector<8x1xf32> to vector<8x32xf32>
    %201 = arith.subf %193, %200 : vector<8x32xf32>
    %202 = arith.mulf %201, %201 : vector<8x32xf32>
    %cst_140 = arith.constant dense<0.000000e+00> : vector<8xf32>
    %203 = vector.multi_reduction <add>, %202, %cst_140 [1] : vector<8x32xf32> to vector<8xf32>
    %204 = vector.shape_cast %203 : vector<8xf32> to vector<8x1xf32>
    %cst_141 = arith.constant 3.200000e+01 : f32
    %205 = vector.broadcast %cst_141 : f32 to vector<8x1xf32>
    %206 = arith.divf %204, %205 : vector<8x1xf32>
    %207 = vector.broadcast %199 : vector<8x1xf32> to vector<8x32xf32>
    %208 = arith.subf %193, %207 : vector<8x32xf32>
    %cst_142 = arith.constant 9.99999974E-6 : f32
    %209 = vector.broadcast %cst_142 : f32 to vector<8x1xf32>
    %210 = arith.addf %206, %209 : vector<8x1xf32>
    %211 = math.rsqrt %210 : vector<8x1xf32>
    %212 = vector.broadcast %211 : vector<8x1xf32> to vector<8x32xf32>
    %213 = arith.mulf %208, %212 : vector<8x32xf32>
    %214 = vector.broadcast %194 : vector<1x32xf32> to vector<8x32xf32>
    %215 = arith.mulf %213, %214 : vector<8x32xf32>
    %216 = vector.broadcast %195 : vector<1x32xf32> to vector<8x32xf32>
    %217 = arith.addf %215, %216 : vector<8x32xf32>
    %c0_143 = arith.constant 0 : index
    %c0_144 = arith.constant 0 : index
    %218 = vector.load %arg14[%c0_143, %c0_144] : memref<32x128xf32, #tpu.memory_space<vmem>>, vector<32x128xf32>
    %cst_145 = arith.constant dense<0.000000e+00> : vector<8x128xf32>
    %219 = tpu.matmul %217, %218, %cst_145 {dimension_numbers = #tpu.dot_dimension_numbers<[1], [0], [0], [1], [0, 0, 1, 1], [], []>} : vector<8x32xf32>, vector<32x128xf32>, vector<8x128xf32> -> vector<8x128xf32>
    %c0_146 = arith.constant 0 : index
    %c0_147 = arith.constant 0 : index
    %220 = vector.load %arg15[%c0_146, %c0_147] : memref<1x128xf32, #tpu.memory_space<vmem>>, vector<1x128xf32>
    %221 = vector.broadcast %220 : vector<1x128xf32> to vector<8x128xf32>
    %222 = arith.addf %219, %221 : vector<8x128xf32>
    %cst_148 = arith.constant 5.000000e-01 : f32
    %223 = vector.broadcast %cst_148 : f32 to vector<8x128xf32>
    %224 = arith.mulf %223, %222 : vector<8x128xf32>
    %cst_149 = arith.constant 0.707106769 : f32
    %225 = vector.broadcast %cst_149 : f32 to vector<8x128xf32>
    %226 = arith.mulf %222, %225 : vector<8x128xf32>
    %227 = math.erf %226 : vector<8x128xf32>
    %cst_150 = arith.constant 1.000000e+00 : f32
    %228 = vector.broadcast %cst_150 : f32 to vector<8x128xf32>
    %229 = arith.addf %228, %227 : vector<8x128xf32>
    %230 = arith.mulf %224, %229 : vector<8x128xf32>
    %c0_151 = arith.constant 0 : index
    %c0_152 = arith.constant 0 : index
    %231 = vector.load %arg16[%c0_151, %c0_152] : memref<128x32xf32, #tpu.memory_space<vmem>>, vector<128x32xf32>
    %cst_153 = arith.constant dense<0.000000e+00> : vector<8x32xf32>
    %232 = tpu.matmul %230, %231, %cst_153 {dimension_numbers = #tpu.dot_dimension_numbers<[1], [0], [0], [1], [0, 0, 1, 1], [], []>} : vector<8x128xf32>, vector<128x32xf32>, vector<8x32xf32> -> vector<8x32xf32>
    %c0_154 = arith.constant 0 : index
    %c0_155 = arith.constant 0 : index
    %233 = vector.load %arg17[%c0_154, %c0_155] : memref<1x32xf32, #tpu.memory_space<vmem>>, vector<1x32xf32>
    %234 = vector.broadcast %233 : vector<1x32xf32> to vector<8x32xf32>
    %235 = arith.addf %232, %234 : vector<8x32xf32>
    %236 = arith.addf %193, %235 : vector<8x32xf32>
    %c0_156 = arith.constant 0 : index
    %c0_157 = arith.constant 0 : index
    %c0_158 = arith.constant 0 : index
    %237 = vector.load %arg18[%c0_156, %c0_157, %c0_158] : memref<1x8x32xf32, #tpu.memory_space<vmem>>, vector<1x8x32xf32>
    %238 = vector.shape_cast %237 : vector<1x8x32xf32> to vector<8x32xf32>
    %239 = vector.shape_cast %236 : vector<8x32xf32> to vector<1x8x32xf32>
    tpu.vector_store %arg18[%c0_156, %c0_157, %c0_158], %239 {strides = array<i32>} : memref<1x8x32xf32, #tpu.memory_space<vmem>>, vector<1x8x32xf32>,
    return
  }
  func.func @transform_0(%arg0: i32) -> (i32, i32, i32) {
    %c0_i32 = arith.constant 0 : i32
    %c0_i32_0 = arith.constant 0 : i32
    %c0_i32_1 = arith.constant 0 : i32
    return %arg0, %c0_i32, %c0_i32_0 : i32, i32, i32
  }
  func.func @transform_1(%arg0: i32) -> (i32, i32) {
    %c0_i32 = arith.constant 0 : i32
    %c0_i32_0 = arith.constant 0 : i32
    %c0_i32_1 = arith.constant 0 : i32
    return %c0_i32, %c0_i32_0 : i32, i32
  }
  func.func @transform_2(%arg0: i32) -> (i32, i32) {
    %c0_i32 = arith.constant 0 : i32
    %c0_i32_0 = arith.constant 0 : i32
    %c0_i32_1 = arith.constant 0 : i32
    return %c0_i32, %c0_i32_0 : i32, i32
  }
  func.func @transform_3(%arg0: i32) -> (i32, i32, i32) {
    %c0_i32 = arith.constant 0 : i32
    %c0_i32_0 = arith.constant 0 : i32
    %c0_i32_1 = arith.constant 0 : i32
    %c0_i32_2 = arith.constant 0 : i32
    return %c0_i32, %c0_i32_0, %c0_i32_1 : i32, i32, i32
  }
  func.func @transform_4(%arg0: i32) -> (i32, i32, i32) {
    %c0_i32 = arith.constant 0 : i32
    %c0_i32_0 = arith.constant 0 : i32
    %c0_i32_1 = arith.constant 0 : i32
    %c0_i32_2 = arith.constant 0 : i32
    return %c0_i32, %c0_i32_0, %c0_i32_1 : i32, i32, i32
  }
  func.func @transform_5(%arg0: i32) -> (i32, i32, i32) {
    %c0_i32 = arith.constant 0 : i32
    %c0_i32_0 = arith.constant 0 : i32
    %c0_i32_1 = arith.constant 0 : i32
    %c0_i32_2 = arith.constant 0 : i32
    return %c0_i32, %c0_i32_0, %c0_i32_1 : i32, i32, i32
  }
  func.func @transform_6(%arg0: i32) -> (i32, i32, i32) {
    %c0_i32 = arith.constant 0 : i32
    %c0_i32_0 = arith.constant 0 : i32
    %c0_i32_1 = arith.constant 0 : i32
    %c0_i32_2 = arith.constant 0 : i32
    return %c0_i32, %c0_i32_0, %c0_i32_1 : i32, i32, i32
  }
  func.func @transform_7(%arg0: i32) -> (i32, i32, i32) {
    %c0_i32 = arith.constant 0 : i32
    %c0_i32_0 = arith.constant 0 : i32
    %c0_i32_1 = arith.constant 0 : i32
    %c0_i32_2 = arith.constant 0 : i32
    return %c0_i32, %c0_i32_0, %c0_i32_1 : i32, i32, i32
  }
  func.func @transform_8(%arg0: i32) -> (i32, i32, i32) {
    %c0_i32 = arith.constant 0 : i32
    %c0_i32_0 = arith.constant 0 : i32
    %c0_i32_1 = arith.constant 0 : i32
    %c0_i32_2 = arith.constant 0 : i32
    return %c0_i32, %c0_i32_0, %c0_i32_1 : i32, i32, i32
  }
  func.func @transform_9(%arg0: i32) -> (i32, i32, i32) {
    %c0_i32 = arith.constant 0 : i32
    %c0_i32_0 = arith.constant 0 : i32
    %c0_i32_1 = arith.constant 0 : i32
    %c0_i32_2 = arith.constant 0 : i32
    return %c0_i32, %c0_i32_0, %c0_i32_1 : i32, i32, i32
  }
  func.func @transform_10(%arg0: i32) -> (i32, i32) {
    %c0_i32 = arith.constant 0 : i32
    %c0_i32_0 = arith.constant 0 : i32
    %c0_i32_1 = arith.constant 0 : i32
    return %c0_i32, %c0_i32_0 : i32, i32
  }
  func.func @transform_11(%arg0: i32) -> (i32, i32) {
    %c0_i32 = arith.constant 0 : i32
    %c0_i32_0 = arith.constant 0 : i32
    %c0_i32_1 = arith.constant 0 : i32
    return %c0_i32, %c0_i32_0 : i32, i32
  }
  func.func @transform_12(%arg0: i32) -> (i32, i32) {
    %c0_i32 = arith.constant 0 : i32
    %c0_i32_0 = arith.constant 0 : i32
    %c0_i32_1 = arith.constant 0 : i32
    return %c0_i32, %c0_i32_0 : i32, i32
  }
  func.func @transform_13(%arg0: i32) -> (i32, i32) {
    %c0_i32 = arith.constant 0 : i32
    %c0_i32_0 = arith.constant 0 : i32
    %c0_i32_1 = arith.constant 0 : i32
    return %c0_i32, %c0_i32_0 : i32, i32
  }
  func.func @transform_14(%arg0: i32) -> (i32, i32) {
    %c0_i32 = arith.constant 0 : i32
    %c0_i32_0 = arith.constant 0 : i32
    %c0_i32_1 = arith.constant 0 : i32
    return %c0_i32, %c0_i32_0 : i32, i32
  }
  func.func @transform_15(%arg0: i32) -> (i32, i32) {
    %c0_i32 = arith.constant 0 : i32
    %c0_i32_0 = arith.constant 0 : i32
    %c0_i32_1 = arith.constant 0 : i32
    return %c0_i32, %c0_i32_0 : i32, i32
  }
  func.func @transform_16(%arg0: i32) -> (i32, i32) {
    %c0_i32 = arith.constant 0 : i32
    %c0_i32_0 = arith.constant 0 : i32
    %c0_i32_1 = arith.constant 0 : i32
    return %c0_i32, %c0_i32_0 : i32, i32
  }
  func.func @transform_17(%arg0: i32) -> (i32, i32, i32) {
    %c0_i32 = arith.constant 0 : i32
    %c0_i32_0 = arith.constant 0 : i32
    %c0_i32_1 = arith.constant 0 : i32
    return %arg0, %c0_i32, %c0_i32_0 : i32, i32, i32
  }
}

</mosaic_0001>

<bundles_post_ra>
// kernel: tile.0
= control target key start
LH: loop header
LB: loop body
LE: loop exit
PB: predicated region body
PF: predicated region fallthrough
CT: control target
= control target key end

     0   :  { %s66_s8 = smov 125   ;;  %s67_s9 = smov 123   ;;  %vm7_vm0 = vcmask 7168   ;;  %s117_s0 = inlined_call_operand.vmem [shape: s32[2,8], index: 0, kind: input, shape index: {}]   ;;  %s118_s1 = inlined_call_operand.vmem [shape: s32[16,1], index: 1, kind: output, shape index: {}]  }
   0x1   :  { %v4_v0 = vld [vmem:[%s117_s0] sm:$0x3]  ;;  %s65_s0 = smov 127   ;;  %s68_s10 = smov 126  }
   0x2   :  { %5 = vst [vmem:[#allocation0] sm:$0x3] %v4_v0  ;;  %s69_s11 = smov 124   ;;  %s70_s12 = smov 122  }
   0x3   :  { %s71_s13 = smov 121  }
   0x9   :  { %v9_v1 = vld [vmem:[#allocation0] sm:$0x3]  }
   0xa   :  { %v21_v2 = vld [vmem:[#allocation0] sm:$0x3]   ;;  %10 = vrot.lane.b32.xlu0 %v9_v1, %s65_s0 }
   0xb   :  { %22 = vrot.lane.b32.xlu1 %v21_v2, %s66_s8  ;;  %v33_v3 = vld [vmem:[#allocation0] sm:$0x3]  }
   0xc   :  { %34 = vrot.lane.b32.xlu2 %v33_v3, %s67_s9  ;;  %v15_v4 = vld [vmem:[#allocation0] sm:$0x3]  }
   0xd   :  { %v27_v5 = vld [vmem:[#allocation0] sm:$0x3]  }
   0xe   :  { %v39_v6 = vld [vmem:[#allocation0] sm:$0x3]  }
   0xf   :  { %v45_v7 = vld [vmem:[#allocation0] sm:$0x3]  }
  0x10   :  { %v6_v8 = vld [vmem:[#allocation0] sm:$0x3]  }
  0x11   :  { %8 = vst.msk [vmem:[%s118_s1] ss:$8 sm:$0x3] %vm7_vm0, %v6_v8  }
  0x12   :  { %16 = vrot.lane.b32.xlu0 %v15_v4, %s68_s10 }
  0x13   :  { %28 = vrot.lane.b32.xlu1 %v27_v5, %s69_s11 }
  0x14   :  { %40 = vrot.lane.b32.xlu2 %v39_v6, %s70_s12 }
  0x1a   :  { %46 = vrot.lane.b32.xlu0 %v45_v7, %s71_s13 }
  0x66   :  { %v35_v9 = vpop.permute.xlu2 %34  }
  0x67   :  { %55 = vst.msk [vmem:[%s118_s1 + $0x5] ss:$8 sm:$0x3] %vm7_vm0, %v35_v9  }
  0x6e   :  { %v41_v10 = vpop.permute.xlu2 %40  }
  0x6f   :  { %56 = vst.msk [vmem:[%s118_s1 + $0x6] ss:$8 sm:$0x3] %vm7_vm0, %v41_v10  }
  0x7c   :  { %v11_v11 = vpop.permute.xlu0 %10  }
  0x7d   :  { %v23_v12 = vpop.permute.xlu1 %22   ;;  %51 = vst.msk [vmem:[%s118_s1 + $0x1] ss:$8 sm:$0x3] %vm7_vm0, %v11_v11  }
  0x7e   :  { %53 = vst.msk [vmem:[%s118_s1 + $0x3] ss:$8 sm:$0x3] %vm7_vm0, %v23_v12  }
  0x84   :  { %v17_v13 = vpop.permute.xlu0 %16  }
  0x85   :  { %v29_v14 = vpop.permute.xlu1 %28   ;;  %52 = vst.msk [vmem:[%s118_s1 + $0x2] ss:$8 sm:$0x3] %vm7_vm0, %v17_v13  }
  0x86   :  { %54 = vst.msk [vmem:[%s118_s1 + $0x4] ss:$8 sm:$0x3] %vm7_vm0, %v29_v14  }
  0x8c   :  { %v47_v15 = vpop.permute.xlu0 %46  }
  0x8d   :  { %57 = vst.msk [vmem:[%s118_s1 + $0x7] ss:$8 sm:$0x3] %vm7_vm0, %v47_v15  }

// kernel: gpt_forward.7
= control target key start
LH: loop header
LB: loop body
LE: loop exit
PB: predicated region body
PF: predicated region fallthrough
CT: control target
= control target key end

     0   :  { %vm24_vm0 = vcmask 261120   ;;  %v145_v4 = vmov 32.0   ;;  %s215_s0 = inlined_call_operand.vmem [shape: f32[16,32], index: 0, kind: input, shape index: {}]   ;;  %s216_s1 = inlined_call_operand.vmem [shape: f32[1,32], index: 1, kind: input, shape index: {}]   ;;  %s217_s2 = inlined_call_operand.vmem [shape: f32[1,32], index: 2, kind: input, shape index: {}]   ;;  %s218_s4 = inlined_call_operand.vmem [shape: f32[1,128], index: 4, kind: input, shape index: {}]   ;;  %s219_s3 = inlined_call_operand.vmem [shape: f32[32,128], index: 3, kind: input, shape index: {}]   ;;  %s220_s5 = inlined_call_operand.vmem [shape: f32[16,128], index: 5, kind: output, shape index: {}]  }
   0x1   :  { %v20_v0 = vld [vmem:[%s215_s0] sm:$0xff]  ;;  %v21_v2 = vld [vmem:[%s215_s0 + $0x8] sm:$0xff]  ;;  %139 = vrcp.f32 %v145_v4  ;;  %v89_v21 = vld [vmem:[%s219_s3 + $0x18] sm:$0xff] }
   0x2   :  { %v25_v1 = vsel %vm24_vm0, %v20_v0, 0.0  ;;  %v28_v3 = vsel %vm24_vm0, %v21_v2, 0.0  ;;  %112 = vmatpush.msra.mxu0 %v89_v21  ;;  %131 = vmatpush.msra.mxu1 %v89_v21  ;;  %v88_v22 = vld [vmem:[%s219_s3 + $0x10] sm:$0xff]  ;;  %v87_v23 = vld [vmem:[%s219_s3 + $0x8] sm:$0xff]  ;;  %v86_v24 = vld [vmem:[%s219_s3] sm:$0xff] }
   0x3   :  { %26 = vadd.xlane.f32.xlu0 %v25_v1  ;;  %v136_v39 = vld [vmem:[%s216_s1] ss:$0 sm:$0xff] }
   0x4   :  { %113 = vmatpush.msra.mxu0 %v88_v22  ;;  %132 = vmatpush.msra.mxu1 %v88_v22  ;;  %v137_v43 = vld [vmem:[%s217_s2] ss:$0 sm:$0xff] }
   0x5   :  { %v138_v53 = vld [vmem:[%s218_s4] ss:$0 sm:$0xff] }
   0x6   :  { %114 = vmatpush.msra.mxu0 %v87_v23  ;;  %133 = vmatpush.msra.mxu1 %v87_v23 }
   0x7   :  { %v140_v5 = vpop.eup %139 }
   0x8   :  { %v32_v6 = vmul.f32 32.0, %v140_v5  ;;  %vm36_vm1 = vweird.f32 %v140_v5  ;;  %115 = vmatpush.msra.mxu0 %v86_v24  ;;  %134 = vmatpush.msra.mxu1 %v86_v24 }
   0xa   :  { %v33_v7 = vsub.f32 1.0, %v32_v6 }
   0xb   :  { %29 = vadd.xlane.f32.xlu0 %v28_v3 }
   0xc   :  { %v34_v8 = vmul.f32 %v140_v5, %v33_v7 }
   0xe   :  { %v35_v9 = vadd.f32 %v140_v5, %v34_v8 }
  0x10   :  { %v37_v10 = vsel %vm36_vm1, %v140_v5, %v35_v9 }
  0x76   :  { %v27_v11 = vpop.xlane.xlu0 %26 }
  0x77   :  { %v38_v12 = vmul.f32 %v37_v10, %v27_v11 }
  0x79   :  { %v40_v13 = vsub.f32 %v20_v0, %v38_v12 }
  0x7b   :  { %v42_v14 = vmul.f32 %v40_v13, %v40_v13 }
  0x7d   :  { %v44_v15 = vsel %vm24_vm0, %v42_v14, 0.0 }
  0x7e   :  { %45 = vadd.xlane.f32.xlu1 %v44_v15  ;;  %v30_v16 = vpop.xlane.xlu0 %29 }
  0x7f   :  { %v39_v17 = vmul.f32 %v37_v10, %v30_v16 }
  0x81   :  { %v41_v18 = vsub.f32 %v21_v2, %v39_v17 }
  0x83   :  { %v43_v19 = vmul.f32 %v41_v18, %v41_v18 }
  0x85   :  { %v47_v20 = vsel %vm24_vm0, %v43_v19, 0.0 }
  0x86   :  { %48 = vadd.xlane.f32.xlu1 %v47_v20 }
  0xf1   :  { %v46_v25 = vpop.xlane.xlu1 %45 }
  0xf2   :  { %v50_v26 = vmul.f32 %v46_v25, %v37_v10 }
  0xf4   :  { %v52_v27 = vadd.f32 1e-05, %v50_v26 }
  0xf6   :  { %141 = vrsqrt.f32 %v52_v27  ;;  %vm60_vm3 = vweird.f32 %v52_v27 }
  0xf9   :  { %v49_v28 = vpop.xlane.xlu1 %48 }
  0xfa   :  { %v51_v29 = vmul.f32 %v49_v28, %v37_v10 }
  0xfc   :  { %v142_v30 = vpop.eup %141  ;;  %v53_v31 = vadd.f32 1e-05, %v51_v29 }
  0xfd   :  { %v55_v32 = vmul.f32 %v142_v30, %v52_v27  ;;  %vm61_vm2 = vweird.f32 %v142_v30 }
  0xfe   :  { %143 = vrsqrt.f32 %v53_v31  ;;  %vm62_vm4 = vmor %vm60_vm3, %vm61_vm2  ;;  %vm70_vm6 = vweird.f32 %v53_v31 }
  0xff   :  { %v56_v33 = vmul.f32 %v142_v30, %v55_v32 }
 0x101   :  { %v57_v34 = vmul.f32 0.5, %v56_v33 }
 0x103   :  { %v58_v35 = vsub.f32 1.5, %v57_v34 }
 0x104   :  { %v144_v36 = vpop.eup %143 }
 0x105   :  { %v59_v37 = vmul.f32 %v142_v30, %v58_v35  ;;  %v65_v38 = vmul.f32 %v144_v36, %v53_v31  ;;  %vm71_vm5 = vweird.f32 %v144_v36 }
 0x106   :  { %vm72_vm7 = vmor %vm70_vm6, %vm71_vm5 }
 0x107   :  { %v63_v40 = vsel %vm62_vm4, %v142_v30, %v59_v37  ;;  %v66_v41 = vmul.f32 %v144_v36, %v65_v38 }
 0x108   :  { %v74_v42 = vmul.f32 %v63_v40, %v40_v13 }
 0x109   :  { %v67_v44 = vmul.f32 0.5, %v66_v41 }
 0x10a   :  { %v79_v45 = vmul.f32 %v136_v39, %v74_v42 }
 0x10b   :  { %v68_v46 = vsub.f32 1.5, %v67_v44 }
 0x10c   :  { %v84_v47 = vadd.f32 %v137_v43, %v79_v45 }
 0x10d   :  { %v69_v48 = vmul.f32 %v144_v36, %v68_v46 }
 0x10e   :  { %129 = vmatmul.msk.f32.vlgmr.msra.gmra.mxu0 %vm24_vm0, %v84_v47 }
 0x10f   :  { %v73_v49 = vsel %vm72_vm7, %v144_v36, %v69_v48 }
 0x110   :  { %v75_v50 = vmul.f32 %v73_v49, %v41_v18 }
 0x112   :  { %v80_v51 = vmul.f32 %v136_v39, %v75_v50 }
 0x114   :  { %v85_v52 = vadd.f32 %v137_v43, %v80_v51 }
 0x116   :  { %130 = vmatmul.msk.f32.vlgmr.msra.gmra.mxu1 %vm24_vm0, %v85_v52 }
 0x18b   :  { %v117_v54 = vpop.f32.mrf.mxu0 }
 0x18c   :  { %v118_v55 = vadd.f32 %v138_v53, %v117_v54 }
 0x18e   :  { %123 = vst [vmem:[%s220_s5] sm:$0xff] %v118_v55 }
 0x193   :  { %v120_v56 = vpop.f32.mrf.mxu1 }
 0x194   :  { %v121_v57 = vadd.f32 %v138_v53, %v120_v56 }
 0x196   :  { %124 = vst [vmem:[%s220_s5 + $0x8] sm:$0xff] %v121_v57 }

// kernel: gpt_forward.4
= control target key start
LH: loop header
LB: loop body
LE: loop exit
PB: predicated region body
PF: predicated region fallthrough
CT: control target
= control target key end

     0   :  { %v154_v0 = vmov 0   ;;  %v19_v23 = vlaneseq  ;;  %vm65_vm0 = vcmask 130048   ;;  %v155_v27 = vmov 0.0   ;;  %s254_s1 = inlined_call_operand.vmem [shape: s32[16,1], index: 1, kind: input, shape index: {}]   ;;  %s255_s2 = inlined_call_operand.vmem [shape: f32[128,32], index: 2, kind: input, shape index: {}]   ;;  %s256_s3 = inlined_call_operand.vmem [shape: f32[16,32], index: 3, kind: input, shape index: {}]   ;;  %s257_s0 = inlined_call_operand.vmem [shape: s32[16,1], index: 0, kind: input, shape index: {}]   ;;  %s258_s4 = inlined_call_operand.vmem [shape: f32[16,32], index: 4, kind: output, shape index: {}]  }
   0x1   :  { %153 = vset.pattern.permute.xlu1 %v154_v0  ;;  %152 = vset.pattern.permute.xlu0 %v154_v0  ;;  %v34_v1 = vld [vmem:[%s254_s1 + $0x8] sm:$0xff]  ;;  %v33_v2 = vld [vmem:[%s254_s1] sm:$0xff]  ;;  %v62_v3 = vld [vmem:[%s255_s2 + $0x78] sm:$0xff]  ;;  %v156_v32 = vmov 1.0   ;;  %vm118_vm5 = vcmask 261120  }
   0x2   :  { %39 = vperm.xlu1 %153, %v34_v1   ;;  %36 = vperm.xlu0 %152, %v33_v2   ;;  %v61_v4 = vld [vmem:[%s255_s2 + $0x70] sm:$0xff]  ;;  %v60_v5 = vld [vmem:[%s255_s2 + $0x68] sm:$0xff]  ;;  %v59_v6 = vld [vmem:[%s255_s2 + $0x60] sm:$0xff]  ;;  %v20_v24 = vand.u32 127, %v19_v23 }
   0x3   :  { %95 = vmatpush.msra.mxu1 %v62_v3  ;;  %133 = vmatpush.msra.mxu2 %v62_v3  ;;  %v64_v7 = vld [vmem:[%s256_s3 + $0x8] sm:$0xff]  ;;  %v17_v9 = vld [vmem:[%s257_s0] sm:$0xff]  ;;  %v58_v10 = vld [vmem:[%s255_s2 + $0x58] sm:$0xff] }
   0x4   :  { %v18_v8 = vld [vmem:[%s257_s0 + $0x8] sm:$0xff]  ;;  %86 = vmatpush.msra.mxu0 %v64_v7  ;;  %v57_v11 = vld [vmem:[%s255_s2 + $0x50] sm:$0xff]  ;;  %v55_v13 = vld [vmem:[%s255_s2 + $0x40] sm:$0xff] }
   0x5   :  { %96 = vmatpush.msra.mxu1 %v61_v4  ;;  %134 = vmatpush.msra.mxu2 %v61_v4  ;;  %v56_v12 = vld [vmem:[%s255_s2 + $0x48] sm:$0xff]  ;;  %v54_v14 = vld [vmem:[%s255_s2 + $0x38] sm:$0xff]  ;;  %v53_v15 = vld [vmem:[%s255_s2 + $0x30] sm:$0xff] }
   0x6   :  { %v52_v16 = vld [vmem:[%s255_s2 + $0x28] sm:$0xff]  ;;  %v51_v17 = vld [vmem:[%s255_s2 + $0x20] sm:$0xff]  ;;  %v50_v19 = vld [vmem:[%s255_s2 + $0x18] sm:$0xff] }
   0x7   :  { %97 = vmatpush.msra.mxu1 %v60_v5  ;;  %135 = vmatpush.msra.mxu2 %v60_v5  ;;  %v63_v18 = vld [vmem:[%s256_s3] sm:$0xff]  ;;  %v49_v20 = vld [vmem:[%s255_s2 + $0x10] sm:$0xff]  ;;  %v48_v21 = vld [vmem:[%s255_s2 + $0x8] sm:$0xff] }
   0x8   :  { %87 = vmatpush.msra.mxu0 %v63_v18  ;;  %v47_v22 = vld [vmem:[%s255_s2] sm:$0xff] }
   0x9   :  { %98 = vmatpush.msra.mxu1 %v59_v6  ;;  %136 = vmatpush.msra.mxu2 %v59_v6 }
   0xa   :  { %25 = vperm.xlu0 %152, %v18_v8   ;;  %22 = vperm.xlu1 %153, %v17_v9  }
   0xb   :  { %99 = vmatpush.msra.mxu1 %v58_v10  ;;  %137 = vmatpush.msra.mxu2 %v58_v10 }
   0xd   :  { %100 = vmatpush.msra.mxu1 %v57_v11  ;;  %138 = vmatpush.msra.mxu2 %v57_v11 }
   0xf   :  { %101 = vmatpush.msra.mxu1 %v56_v12  ;;  %139 = vmatpush.msra.mxu2 %v56_v12 }
  0x11   :  { %102 = vmatpush.msra.mxu1 %v55_v13  ;;  %140 = vmatpush.msra.mxu2 %v55_v13 }
  0x13   :  { %103 = vmatpush.msra.mxu1 %v54_v14  ;;  %141 = vmatpush.msra.mxu2 %v54_v14 }
  0x15   :  { %104 = vmatpush.msra.mxu1 %v53_v15  ;;  %142 = vmatpush.msra.mxu2 %v53_v15 }
  0x17   :  { %105 = vmatpush.msra.mxu1 %v52_v16  ;;  %143 = vmatpush.msra.mxu2 %v52_v16 }
  0x19   :  { %106 = vmatpush.msra.mxu1 %v51_v17  ;;  %144 = vmatpush.msra.mxu2 %v51_v17 }
  0x1b   :  { %107 = vmatpush.msra.mxu1 %v50_v19  ;;  %145 = vmatpush.msra.mxu2 %v50_v19 }
  0x1d   :  { %108 = vmatpush.msra.mxu1 %v49_v20  ;;  %146 = vmatpush.msra.mxu2 %v49_v20 }
  0x1f   :  { %109 = vmatpush.msra.mxu1 %v48_v21  ;;  %147 = vmatpush.msra.mxu2 %v48_v21 }
  0x21   :  { %110 = vmatpush.msra.mxu1 %v47_v22  ;;  %148 = vmatpush.msra.mxu2 %v47_v22 }
  0x74   :  { %v40_v25 = vpop.permute.xlu1 %39  ;;  %v37_v26 = vpop.permute.xlu0 %36 }
  0x75   :  { %vm41_vm1 = vcmp.eq.s32.totalorder %v37_v26, %v20_v24  ;;  %vm42_vm2 = vcmp.eq.s32.totalorder %v40_v25, %v20_v24 }
  0x76   :  { %v127_v28 = vsel %vm41_vm1, 1.0, %v155_v27  ;;  %v128_v31 = vsel %vm42_vm2, 1.0, %v155_v27 }
  0x77   :  { %129 = vmatmul.msk.f32.vlgmr.msra.gmra.mxu0 %vm65_vm0, %v127_v28 }
  0x7c   :  { %v26_v29 = vpop.permute.xlu0 %25  ;;  %v23_v30 = vpop.permute.xlu1 %22 }
  0x7d   :  { %vm28_vm3 = vcmp.eq.s32.totalorder %v26_v29, %v20_v24  ;;  %vm27_vm4 = vcmp.eq.s32.totalorder %v23_v30, %v20_v24 }
  0x7e   :  { %131 = vmatmul.msk.f32.vlgmr.msra.gmra.mxu1 %vm27_vm4, %v156_v32  ;;  %132 = vmatmul.msk.f32.vlgmr.msra.gmra.mxu2 %vm28_vm3, %v156_v32 }
  0x7f   :  { %130 = vmatmul.msk.f32.gmra.mxu0 %vm65_vm0, %v128_v31 }
  0xf4   :  { %v89_v33 = vpop.f32.mrf.mxu0 }
  0xfb   :  { %v112_v34 = vpop.f32.mrf.mxu1 }
  0xfc   :  { %v113_v35 = vadd.f32 %v112_v34, %v89_v33  ;;  %v92_v36 = vpop.f32.mrf.mxu0 }
  0xfe   :  { %119 = vst.msk [vmem:[%s258_s4] sm:$0xff] %vm118_vm5, %v113_v35 }
 0x101   :  { %v115_v37 = vpop.f32.mrf.mxu2 }
 0x102   :  { %v116_v38 = vadd.f32 %v115_v37, %v92_v36 }
 0x104   :  { %120 = vst.msk [vmem:[%s258_s4 + $0x8] sm:$0xff] %vm118_vm5, %v116_v38 }

// kernel: gpt_forward.5
= control target key start
LH: loop header
LB: loop body
LE: loop exit
PB: predicated region body
PF: predicated region fallthrough
CT: control target
= control target key end

     0   :  { %s1795_s24 = smov 0   ;;  %s2186_s0 = inlined_call_operand.vmem [shape: f32[2,8,32], index: 0, kind: input, shape index: {}]   ;;  %s2187_s1 = inlined_call_operand.vmem [shape: f32[1,32], index: 1, kind: input, shape index: {}]   ;;  %s2188_s2 = inlined_call_operand.vmem [shape: f32[1,32], index: 2, kind: input, shape index: {}]   ;;  %s2189_s3 = inlined_call_operand.vmem [shape: f32[4,32,8], index: 3, kind: input, shape index: {}]   ;;  %s2190_s4 = inlined_call_operand.vmem [shape: f32[4,1,8], index: 4, kind: input, shape index: {}]   ;;  %s2191_s5 = inlined_call_operand.vmem [shape: f32[4,32,8], index: 5, kind: input, shape index: {}]   ;;  %s2192_s6 = inlined_call_operand.vmem [shape: f32[4,1,8], index: 6, kind: input, shape index: {}]   ;;  %s2193_s7 = inlined_call_operand.vmem [shape: f32[4,32,8], index: 7, kind: input, shape index: {}]   ;;  %s2194_s8 = inlined_call_operand.vmem [shape: f32[4,1,8], index: 8, kind: input, shape index: {}]   ;;  %s2195_s9 = inlined_call_operand.vmem [shape: f32[4,8,32], index: 9, kind: input, shape index: {}]   ;;  %s2196_s10 = inlined_call_operand.vmem [shape: f32[1,32], index: 10, kind: input, shape index: {}]   ;;  %s2197_s11 = inlined_call_operand.vmem [shape: f32[1,32], index: 11, kind: input, shape index: {}]   ;;  %s2198_s12 = inlined_call_operand.vmem [shape: f32[1,32], index: 12, kind: input, shape index: {}]   ;;  %s2199_s13 = inlined_call_operand.vmem [shape: f32[32,128], index: 13, kind: input, shape index: {}]   ;;  %s2200_s14 = inlined_call_operand.vmem [shape: f32[1,128], index: 14, kind: input, shape index: {}]   ;;  %s2201_s15 = inlined_call_operand.vmem [shape: f32[128,32], index: 15, kind: input, shape index: {}]   ;;  %s2202_s16 = inlined_call_operand.vmem [shape: f32[1,32], index: 16, kind: input, shape index: {}]   ;;  %s2203_s17 = inlined_call_operand.vmem [shape: f32[2,8,32], index: 17, kind: output, shape index: {}]  }
   0x1   :  { %2204 = sst [smem:[#allocation2_spill]] %s2186_s0 }
   0x2   :  { %2205 = sst [smem:[#allocation3_spill]] %s2187_s1 }
   0x3 LB: > { %s1557_s25 = sadd.s32 4294967295, %s1702_s24   ;;  %p1561_p0 = scmp.ge.s32.totalorder %s1702_s24, 1  ;;  %s1702_s24 = sphi %s1795_s24, %s27_s24  }
   0x4   : > { %p486_p1 = scmp.lt.s32.totalorder %s1702_s24, 3 }
   0x6   : > { %p487_p2 = pnand %p1561_p0, %p486_p1 }
   0x7   : > { %p536_p3 = scmp.lt.s32.totalorder (!%p487_p2), %s1557_s25, 1  ;;  %s2206_s29 = sld [smem:[#allocation2_spill]] (!%p487_p2) }
   0x8   : > { %490 = sbr.rel (%p487_p2) target bundleno = 3149 (0xc4d), region = 88 }
   0xd   : > { %s2209_s25 = smov (!%p536_p3, %s1557_s25), 1  ;;  %vm547_vm0 = vcmask 261120   ;;  %v1704_v2 = vmov 32.0   ;;  %v593_v14 = vld [vmem:[%s2189_s3 + $0x18] sm:$0xff]  ;;  %v592_v16 = vld [vmem:[%s2189_s3 + $0x10] sm:$0xff]  ;;  %v591_v18 = vld [vmem:[%s2189_s3 + $0x8] sm:$0xff] }
   0xe   : > { %s1562_s26 = sshll.u32 %s2209_s25, 3  ;;  %1672 = vrcp.f32 %v1704_v2  ;;  %v652_v15 = vld [vmem:[%s2193_s7 + $0x18] sm:$0xff]  ;;  %613 = vmatpush.msra.mxu1 %v593_v14  ;;  %v651_v17 = vld [vmem:[%s2193_s7 + $0x10] sm:$0xff]  ;;  %v650_v19 = vld [vmem:[%s2193_s7 + $0x8] sm:$0xff]  ;;  %vm677_vm5 = vcmask 64512  }
   0xf   : > { %s539_s0 = scalar_lea.vmem %s2206_s29, %s1562_s26  ;;  %669 = vmatpush.msra.mxu2 %v652_v15  ;;  %v590_v20 = vld [vmem:[%s2189_s3] sm:$0xff]  ;;  %v624_v22 = vld [vmem:[%s2191_s5 + $0x18] sm:$0xff]  ;;  %v623_v24 = vld [vmem:[%s2191_s5 + $0x10] sm:$0xff]  ;;  %s2207_s29 = sld [smem:[#allocation3_spill]] }
  0x10   : > { %v1811_v0 = vld [vmem:[%s539_s0] sm:$0xff]  ;;  %614 = vmatpush.msra.mxu1 %v592_v16  ;;  %v1573_v23 = vld [vmem:[%s2189_s3 + $0x38] sm:$0xff]  ;;  %v1572_v25 = vld [vmem:[%s2189_s3 + $0x30] sm:$0xff]  ;;  %s543_s21 = scalar_lea.vmem %s2203_s17, %s1562_s26 }
  0x11   : > { %v548_v1 = vsel %vm547_vm0, %v1811_v0, 0.0  ;;  %670 = vmatpush.msra.mxu2 %v651_v17  ;;  %v649_v21 = vld [vmem:[%s2193_s7] sm:$0xff]  ;;  %v622_v26 = vld [vmem:[%s2191_s5 + $0x8] sm:$0xff]  ;;  %v1579_v45 = vld [vmem:[%s2191_s5 + $0x38] sm:$0xff] }
  0x12   : > { %549 = vadd.xlane.f32.xlu0 %v548_v1  ;;  %615 = vmatpush.msra.mxu1 %v591_v18  ;;  %v1571_v27 = vld [vmem:[%s2189_s3 + $0x28] sm:$0xff]  ;;  %v621_v30 = vld [vmem:[%s2191_s5] sm:$0xff]  ;;  %v1585_v46 = vld [vmem:[%s2193_s7 + $0x38] sm:$0xff] }
  0x13   : > { %671 = vmatpush.msra.mxu2 %v650_v19  ;;  %v1570_v31 = vld [vmem:[%s2189_s3 + $0x20] sm:$0xff]  ;;  %v1578_v47 = vld [vmem:[%s2191_s5 + $0x30] sm:$0xff]  ;;  %v1577_v49 = vld [vmem:[%s2191_s5 + $0x28] sm:$0xff] }
  0x14   : > { %v1673_v3 = vpop.eup %1672  ;;  %616 = vmatpush.msra.mxu1 %v590_v20  ;;  %v1654_v41 = vld [vmem:[%s2188_s2] ss:$0 sm:$0xff]  ;;  %v1584_v48 = vld [vmem:[%s2193_s7 + $0x30] sm:$0xff]  ;;  %v1583_v50 = vld [vmem:[%s2193_s7 + $0x28] sm:$0xff] }
  0x15   : > { %v552_v4 = vmul.f32 32.0, %v1673_v3  ;;  %vm556_vm1 = vweird.f32 %v1673_v3  ;;  %672 = vmatpush.msra.mxu2 %v649_v21  ;;  %v1653_v39 = vld [vmem:[%s2207_s29] ss:$0 sm:$0xff]  ;;  %v1659_v62 = vld [vmem:[%s2192_s6 + $0x1] ss:$0 sm:$0xff] }
  0x16   : > { %641 = vmatpush.msrb.mxu1 %v624_v22  ;;  %v1576_v51 = vld [vmem:[%s2191_s5 + $0x20] sm:$0xff] }
  0x17   : > { %v553_v5 = vsub.f32 1.0, %v552_v4  ;;  %776 = vmatpush.msrb.mxu2 %v1573_v23  ;;  %v1582_v52 = vld [vmem:[%s2193_s7 + $0x20] sm:$0xff] }
  0x18   : > { %642 = vmatpush.msrb.mxu1 %v623_v24  ;;  %v1657_v54 = vld [vmem:[%s2192_s6] ss:$0 sm:$0xff] }
  0x19   : > { %v554_v6 = vmul.f32 %v1673_v3, %v553_v5  ;;  %777 = vmatpush.msrb.mxu2 %v1572_v25  ;;  %v1656_v55 = vld [vmem:[%s2194_s8] ss:$0 sm:$0xff] }
  0x1a   : > { %643 = vmatpush.msrb.mxu1 %v622_v26  ;;  %v1655_v57 = vld [vmem:[%s2190_s4] ss:$0 sm:$0xff] }
  0x1b   : > { %v555_v7 = vadd.f32 %v1673_v3, %v554_v6  ;;  %778 = vmatpush.msrb.mxu2 %v1571_v27  ;;  %v585_v6 = vlaneseq }
  0x1c   : > { %644 = vmatpush.msrb.mxu1 %v621_v30 }
  0x1d   : > { %v1815_v8 = vsel %vm556_vm1, %v1673_v3, %v555_v7  ;;  %779 = vmatpush.msrb.mxu2 %v1570_v31  ;;  %v1660_v3 = vld [vmem:[%s2194_s8 + $0x1] ss:$0 sm:$0xff]  ;;  %v1931_v7 = vshrl.u32 %v585_v6, 7  ;;  %v1597_v31 = vld [vmem:[%s2189_s3 + $0x58] sm:$0xff] }
  0x85   : > { %v550_v9 = vpop.xlane.xlu0 %549 }
  0x86   : > { %v558_v10 = vmul.f32 %v1815_v8, %v550_v9  ;;  %v1933_v9 = vand.u32 127, %v585_v6  ;;  %v1606_v6 = vld [vmem:[%s2193_s7 + $0x40] sm:$0xff] }
  0x88   : > { %v559_v11 = vsub.f32 %v1811_v0, %v558_v10  ;;  %vm589_vm6 = vcmp.ge.s32.totalorder %v1931_v7, %v1933_v9 }
  0x8a   : > { %v560_v12 = vmul.f32 %v559_v11, %v559_v11 }
  0x8c   : > { %v561_v13 = vsel %vm547_vm0, %v560_v12, 0.0 }
  0x8d   : > { %562 = vadd.xlane.f32.xlu0 %v561_v13 }
 0x100   : > { %v563_v28 = vpop.xlane.xlu0 %562 }
 0x101   : > { %v564_v29 = vmul.f32 %v563_v28, %v1815_v8 }
 0x103   : > { %v565_v32 = vadd.f32 1e-05, %v564_v29 }
 0x105   : > { %1674 = vrsqrt.f32 %v565_v32  ;;  %vm572_vm3 = vweird.f32 %v565_v32 }
 0x10b   : > { %v1675_v33 = vpop.eup %1674 }
 0x10c   : > { %v567_v34 = vmul.f32 %v1675_v33, %v565_v32  ;;  %vm573_vm2 = vweird.f32 %v1675_v33  ;;  %v1596_v32 = vld [vmem:[%s2189_s3 + $0x50] sm:$0xff] }
 0x10d   : > { %vm574_vm4 = vmor %vm572_vm3, %vm573_vm2 }
 0x10e   : > { %v568_v35 = vmul.f32 %v1675_v33, %v567_v34  ;;  %v1595_v34 = vld [vmem:[%s2189_s3 + $0x48] sm:$0xff] }
 0x110   : > { %v569_v36 = vmul.f32 0.5, %v568_v35  ;;  %v1594_v35 = vld [vmem:[%s2189_s3 + $0x40] sm:$0xff] }
 0x112   : > { %v570_v37 = vsub.f32 1.5, %v569_v36 }
 0x114   : > { %v571_v38 = vmul.f32 %v1675_v33, %v570_v37  ;;  %v753_v37 = vld [vmem:[%s2195_s9] sm:$0xff] }
 0x116   : > { %v575_v40 = vsel %vm574_vm4, %v1675_v33, %v571_v38  ;;  %v1658_v33 = vld [vmem:[%s2190_s4 + $0x1] ss:$0 sm:$0xff] }
 0x117   : > { %v576_v42 = vmul.f32 %v575_v40, %v559_v11 }
 0x119   : > { %v580_v43 = vmul.f32 %v1653_v39, %v576_v42 }
 0x11b   : > { %v1875_v44 = vadd.f32 %v1654_v41, %v580_v43 }
 0x11d   : > { %1564 = vmatmul.msk.f32.vlgmr.msra.gmra.mxu1 %vm547_vm0, %v1875_v44  ;;  %1566 = vmatmul.msk.f32.vlgmr.msra.gmra.mxu2 %vm547_vm0, %v1875_v44 }
 0x11e   : > { %806 = vmatpush.msra.mxu1 %v1579_v45  ;;  %836 = vmatpush.msra.mxu2 %v1585_v46 }
 0x120   : > { %807 = vmatpush.msra.mxu1 %v1578_v47  ;;  %837 = vmatpush.msra.mxu2 %v1584_v48 }
 0x122   : > { %808 = vmatpush.msra.mxu1 %v1577_v49  ;;  %838 = vmatpush.msra.mxu2 %v1583_v50  ;;  %v1603_v49 = vld [vmem:[%s2191_s5 + $0x58] sm:$0xff]  ;;  %v1602_v50 = vld [vmem:[%s2191_s5 + $0x50] sm:$0xff] }
 0x124   : > { %809 = vmatpush.msra.mxu1 %v1576_v51  ;;  %839 = vmatpush.msra.mxu2 %v1582_v52  ;;  %v1601_v51 = vld [vmem:[%s2191_s5 + $0x48] sm:$0xff]  ;;  %v1600_v52 = vld [vmem:[%s2191_s5 + $0x40] sm:$0xff] }
 0x125   : > { %1565 = vmatmul.msk.f32.vlgmr.msrb.gmra.mxu1 %vm547_vm0, %v1875_v44  ;;  %1575 = vmatmul.msk.f32.vlgmr.msrb.gmra.mxu2 %vm547_vm0, %v1875_v44 }
 0x126   : > { %962 = vmatpush.msrb.mxu2 %v753_v37 }
 0x12d   : > { %1581 = vmatmul.msk.f32.vlgmr.msra.gmra.mxu1 %vm547_vm0, %v1875_v44  ;;  %1587 = vmatmul.msk.f32.vlgmr.msra.gmra.mxu2 %vm547_vm0, %v1875_v44 }
 0x19a   : > { %v618_v53 = vpop.f32.mrf.mxu1 }
 0x19b   : > { %v619_v61 = vadd.f32 %v1655_v57, %v618_v53 }
 0x1a0   : > { %v674_v56 = vpop.f32.mrf.mxu2 }
 0x1a1   : > { %v675_v60 = vadd.f32 %v1656_v55, %v674_v56 }
 0x1a2   : > { %v646_v58 = vpop.f32.mrf.mxu1 }
 0x1a3   : > { %v647_v59 = vadd.f32 %v1657_v54, %v646_v58 }
 0x1a5   : > { %1567 = vmatpush.xpose.msk.msra.mxu3 %vm677_vm5, %v647_v59 }
 0x1a8   : > { %1568 = vmatmul.msk.f32.vlgmr.msra.gmra.mxu3 %vm677_vm5, %v619_v61  ;;  %v781_v63 = vpop.f32.mrf.mxu2 }
 0x1a9   : > { %748 = vmatpush.msrb.mxu3 %v675_v60  ;;  %v782_v36 = vadd.f32 %v1658_v33, %v781_v63 }
 0x1aa   : > { %v811_v1 = vpop.f32.mrf.mxu1 }
 0x1ab   : > { %v812_v2 = vadd.f32 %v1659_v62, %v811_v1 }
 0x1ad   : > { %1588 = vmatpush.xpose.msk.msra.mxu3 %vm677_vm5, %v812_v2  ;;  %v1591_v2 = vld [vmem:[%s2195_s9 + $0x8] sm:$0xff] }
 0x1ae   : > { %939 = vmatpush.msrb.mxu1 %v1591_v2 }
 0x1b0   : > { %v841_v4 = vpop.f32.mrf.mxu2 }
 0x1b1   : > { %v842_v5 = vadd.f32 %v1660_v3, %v841_v4  ;;  %v1609_v3 = vld [vmem:[%s2193_s7 + $0x58] sm:$0xff]  ;;  %v1608_v4 = vld [vmem:[%s2193_s7 + $0x50] sm:$0xff] }
 0x1b2   : > { %1049 = vmatpush.msra.mxu1 %v1609_v3 }
 0x1b3   : > { %914 = vmatpush.msra.mxu0 %v842_v5  ;;  %v1607_v5 = vld [vmem:[%s2193_s7 + $0x48] sm:$0xff] }
 0x1b4   : > { %1050 = vmatpush.msra.mxu1 %v1608_v4 }
 0x1b5   : > { %1019 = vmatpush.msrb.mxu0 %v1603_v49 }
 0x1b6   : > { %1051 = vmatpush.msra.mxu1 %v1607_v5 }
 0x1b7   : > { %1020 = vmatpush.msrb.mxu0 %v1602_v50 }
 0x1b8   : > { %1052 = vmatpush.msra.mxu1 %v1606_v6 }
 0x1b9   : > { %1021 = vmatpush.msrb.mxu0 %v1601_v51 }
 0x1bb   : > { %1022 = vmatpush.msrb.mxu0 %v1600_v52 }
 0x22b   : > { %v701_v10 = vpop.f32.mrf.mxu3 }
 0x22c   : > { %v704_v11 = vmul.f32 0.35355338, %v701_v10  ;;  %v1620_v10 = vld [vmem:[%s2189_s3 + $0x78] sm:$0xff] }
 0x22e   : > { %v705_v12 = vsel %vm589_vm6, %v704_v11, -1e+30 }
 0x22f   : > { %v706_v13 = vsel %vm677_vm5, %v705_v12, -inf }
 0x230   : > { %707 = vmax.xlane.f32.xlu1 %v706_v13  ;;  %v1618_v13 = vld [vmem:[%s2189_s3 + $0x68] sm:$0xff] }
 0x2a3   : > { %v708_v14 = vpop.xlane.xlu1 %707 }
 0x2a4   : > { %v709_v15 = vsub.f32 %v705_v12, %v708_v14  ;;  %v1619_v12 = vld [vmem:[%s2189_s3 + $0x70] sm:$0xff]  ;;  %v1662_v14 = vld [vmem:[%s2192_s6 + $0x2] ss:$0 sm:$0xff] }
 0x2a6   : > { %v710_v16 = vmul.f32 1.442695, %v709_v15  ;;  %v1617_v15 = vld [vmem:[%s2189_s3 + $0x60] sm:$0xff] }
 0x2a8   : > { %1676 = vpow2.f32 %v710_v16  ;;  %v1661_v16 = vld [vmem:[%s2190_s4 + $0x2] ss:$0 sm:$0xff] }
 0x2ae   : > { %v1677_v17 = vpop.eup %1676 }
 0x2af   : > { %v712_v18 = vsel %vm677_vm5, %v1677_v17, 0.0 }
 0x2b0   : > { %713 = vadd.xlane.f32.xlu1 %v712_v18 }
 0x323   : > { %v714_v19 = vpop.xlane.xlu1 %713 }
 0x324   : > { %1678 = vrcp.f32 %v714_v19  ;;  %v726_v23 = vand.u32 2147483648, %v714_v19  ;;  %v724_v25 = vand.u32 2147483647, %v714_v19  ;;  %vm720_vm8 = vweird.f32 %v714_v19 }
 0x326   : > { %v727_v27 = vor.u32 1.1754944e-38, %v726_v23  ;;  %vm725_vm10 = vcmp.eq.f32.partialorder %v724_v25, 8.507059e+37  ;;  %v1624_v23 = vld [vmem:[%s2191_s5 + $0x68] sm:$0xff]  ;;  %v1615_v25 = vld [vmem:[%s2195_s9 + $0x10] sm:$0xff] }
 0x32a   : > { %v1679_v20 = vpop.eup %1678 }
 0x32b   : > { %v716_v21 = vmul.f32 %v1679_v20, %v714_v19  ;;  %vm721_vm7 = vweird.f32 %v1679_v20 }
 0x32c   : > { %vm722_vm9 = vmor %vm720_vm8, %vm721_vm7 }
 0x32d   : > { %v717_v22 = vsub.f32 1.0, %v716_v21 }
 0x32f   : > { %v718_v24 = vmul.f32 %v1679_v20, %v717_v22  ;;  %v1625_v22 = vld [vmem:[%s2191_s5 + $0x70] sm:$0xff] }
 0x331   : > { %v719_v26 = vadd.f32 %v1679_v20, %v718_v24  ;;  %v1623_v24 = vld [vmem:[%s2191_s5 + $0x60] sm:$0xff] }
 0x333   : > { %v723_v28 = vsel %vm722_vm9, %v1679_v20, %v719_v26  ;;  %v1626_v20 = vld [vmem:[%s2191_s5 + $0x78] sm:$0xff] }
 0x334   : > { %v728_v29 = vsel %vm725_vm10, %v727_v27, %v723_v28 }
 0x335   : > { %v729_v30 = vmul.f32 %v1677_v17, %v728_v29  ;;  %v1663_v29 = vld [vmem:[%s2194_s8 + $0x2] ss:$0 sm:$0xff] }
 0x337   : > { %1569 = vmatmul.msk.f32.vlgmr.msrb.gmra.mxu3 %vm677_vm5, %v729_v30 }
 0x338   : > { %989 = vmatpush.msrb.mxu3 %v1597_v31 }
 0x33a   : > { %990 = vmatpush.msrb.mxu3 %v1596_v32 }
 0x33c   : > { %991 = vmatpush.msrb.mxu3 %v1595_v34 }
 0x33e   : > { %992 = vmatpush.msrb.mxu3 %v1594_v35 }
 0x33f   : > { %1589 = vmatmul.msk.f32.vlgmr.msra.gmra.mxu3 %vm677_vm5, %v782_v36  ;;  %v1665_v36 = vld [vmem:[%s2192_s6 + $0x3] ss:$0 sm:$0xff] }
 0x347   : > { %1599 = vmatmul.msk.f32.vlgmr.msrb.gmra.mxu3 %vm547_vm0, %v1875_v44 }
 0x3ba   : > { %v750_v38 = vpop.f32.mrf.mxu3 }
 0x3bb   : > { %1593 = vmatmul.msk.f32.vlgmr.msrb.gmra.mxu2 %vm677_vm5, %v750_v38 }
 0x3c2   : > { %v867_v39 = vpop.f32.mrf.mxu3 }
 0x3c3   : > { %v870_v40 = vmul.f32 0.35355338, %v867_v39 }
 0x3c5   : > { %v871_v41 = vsel %vm589_vm6, %v870_v40, -1e+30 }
 0x3c6   : > { %v872_v42 = vsel %vm677_vm5, %v871_v41, -inf }
 0x3c7   : > { %873 = vmax.xlane.f32.xlu2 %v872_v42 }
 0x3ca   : > { %v994_v18 = vpop.f32.mrf.mxu3 }
 0x3cb   : > { %v995_v21 = vadd.f32 %v1661_v16, %v994_v18  ;;  %v1638_v18 = vld [vmem:[%s2195_s9 + $0x18] sm:$0xff] }
 0x43a   : > { %v874_v43 = vpop.xlane.xlu2 %873 }
 0x43b   : > { %v875_v45 = vsub.f32 %v871_v41, %v874_v43 }
 0x43d   : > { %v876_v46 = vmul.f32 1.442695, %v875_v45  ;;  %v1632_v45 = vld [vmem:[%s2193_s7 + $0x78] sm:$0xff] }
 0x43e   : > { %v964_v26 = vpop.f32.mrf.mxu2 }
 0x43f   : > { %1680 = vpow2.f32 %v876_v46  ;;  %v1631_v46 = vld [vmem:[%s2193_s7 + $0x70] sm:$0xff] }
 0x445   : > { %v1681_v47 = vpop.eup %1680 }
 0x446   : > { %v878_v48 = vsel %vm677_vm5, %v1681_v47, 0.0 }
 0x447   : > { %879 = vadd.xlane.f32.xlu2 %v878_v48  ;;  %v1629_v48 = vld [vmem:[%s2193_s7 + $0x60] sm:$0xff] }
 0x4ba   : > { %v880_v53 = vpop.xlane.xlu2 %879 }
 0x4bb   : > { %1682 = vrcp.f32 %v880_v53  ;;  %v892_v57 = vand.u32 2147483648, %v880_v53  ;;  %v890_v59 = vand.u32 2147483647, %v880_v53  ;;  %vm886_vm12 = vweird.f32 %v880_v53 }
 0x4bd   : > { %v893_v61 = vor.u32 1.1754944e-38, %v892_v57  ;;  %vm891_vm14 = vcmp.eq.f32.partialorder %v890_v59, 8.507059e+37 }
 0x4c1   : > { %v1683_v54 = vpop.eup %1682 }
 0x4c2   : > { %v882_v55 = vmul.f32 %v1683_v54, %v880_v53  ;;  %vm887_vm11 = vweird.f32 %v1683_v54 }
 0x4c3   : > { %vm888_vm13 = vmor %vm886_vm12, %vm887_vm11 }
 0x4c4   : > { %v883_v56 = vsub.f32 1.0, %v882_v55 }
 0x4c6   : > { %v884_v58 = vmul.f32 %v1683_v54, %v883_v56 }
 0x4c8   : > { %v885_v60 = vadd.f32 %v1683_v54, %v884_v58 }
 0x4ca   : > { %v889_v62 = vsel %vm888_vm13, %v1683_v54, %v885_v60 }
 0x4cb   : > { %v894_v63 = vsel %vm891_vm14, %v893_v61, %v889_v62  ;;  %v1664_v62 = vld [vmem:[%s2190_s4 + $0x3] ss:$0 sm:$0xff] }
 0x4cc   : > { %v895_v1 = vmul.f32 %v1681_v47, %v894_v63  ;;  %v1630_v47 = vld [vmem:[%s2193_s7 + $0x68] sm:$0xff] }
 0x4ce   : > { %1590 = vmatmul.msk.f32.vlgmr.msra.gmra.mxu0 %vm677_vm5, %v895_v1  ;;  %v1666_v1 = vld [vmem:[%s2194_s8 + $0x3] ss:$0 sm:$0xff] }
 0x4cf   : > { %1152 = vmatpush.msra.mxu0 %v1615_v25 }
 0x4d6   : > { %1605 = vmatmul.msk.f32.vlgmr.msrb.gmra.mxu0 %vm547_vm0, %v1875_v44 }
 0x54b   : > { %v916_v11 = vpop.f32.mrf.mxu0 }
 0x54c   : > { %1592 = vmatmul.msk.f32.vlgmr.msrb.gmra.mxu1 %vm677_vm5, %v916_v11 }
 0x54d   : > { %1180 = vmatpush.msrb.mxu1 %v1620_v10 }
 0x54f   : > { %1181 = vmatpush.msrb.mxu1 %v1619_v12 }
 0x551   : > { %1182 = vmatpush.msrb.mxu1 %v1618_v13 }
 0x553   : > { %v1024_v17 = vpop.f32.mrf.mxu0  ;;  %1183 = vmatpush.msrb.mxu1 %v1617_v15 }
 0x554   : > { %v1025_v19 = vadd.f32 %v1662_v14, %v1024_v17  ;;  %1611 = vmatmul.msk.f32.vlgmr.msra.gmra.mxu1 %vm547_vm0, %v1875_v44 }
 0x556   : > { %1612 = vmatpush.xpose.msk.msra.mxu2 %vm677_vm5, %v1025_v19 }
 0x559   : > { %1613 = vmatmul.msk.f32.vlgmr.msra.gmra.mxu2 %vm677_vm5, %v995_v21 }
 0x55a   : > { %1210 = vmatpush.msrb.mxu2 %v1626_v20 }
 0x55c   : > { %1211 = vmatpush.msrb.mxu2 %v1625_v22  ;;  %1622 = vmatmul.msk.f32.vlgmr.msrb.gmra.mxu1 %vm547_vm0, %v1875_v44 }
 0x55e   : > { %1212 = vmatpush.msrb.mxu2 %v1624_v23 }
 0x560   : > { %1213 = vmatpush.msrb.mxu2 %v1623_v24 }
 0x561   : > { %1628 = vmatmul.msk.f32.vlgmr.msrb.gmra.mxu2 %vm547_vm0, %v1875_v44 }
 0x562   : > { %1343 = vmatpush.msra.mxu2 %v1638_v18  ;;  %v1467_v18 = vld [vmem:[%s2201_s15 + $0x28] sm:$0xff] }
 0x5c9   : > { %v941_v27 = vpop.f32.mrf.mxu1 }
 0x5ca   : > { %v965_v28 = vadd.f32 %v964_v26, %v941_v27 }
 0x5d1   : > { %v1054_v30 = vpop.f32.mrf.mxu1 }
 0x5d2   : > { %v1055_v31 = vadd.f32 %v1663_v29, %v1054_v30 }
 0x5d4   : > { %1127 = vmatpush.msra.mxu3 %v1055_v31 }
 0x5d6   : > { %1240 = vmatpush.msrb.mxu3 %v1632_v45 }
 0x5d8   : > { %1241 = vmatpush.msrb.mxu3 %v1631_v46 }
 0x5d9   : > { %v1185_v63 = vpop.f32.mrf.mxu1 }
 0x5da   : > { %1242 = vmatpush.msrb.mxu3 %v1630_v47  ;;  %v1186_v2 = vadd.f32 %v1664_v62, %v1185_v63  ;;  %v1670_v62 = vld [vmem:[%s2200_s14] ss:$0 sm:$0xff] }
 0x5db   : > { %v1474_v63 = vld [vmem:[%s2201_s15 + $0x60] sm:$0xff] }
 0x5dc   : > { %v1080_v32 = vpop.f32.mrf.mxu2  ;;  %1243 = vmatpush.msrb.mxu3 %v1629_v48 }
 0x5dd   : > { %v1083_v33 = vmul.f32 0.35355338, %v1080_v32  ;;  %v1667_v32 = vld [vmem:[%s2196_s10] ss:$0 sm:$0xff] }
 0x5df   : > { %v1084_v34 = vsel %vm589_vm6, %v1083_v33, -1e+30 }
 0x5e0   : > { %v1085_v35 = vsel %vm677_vm5, %v1084_v34, -inf }
 0x5e1   : > { %1086 = vmax.xlane.f32.xlu0 %v1085_v35 }
 0x5e4   : > { %v1215_v37 = vpop.f32.mrf.mxu2 }
 0x5e5   : > { %v1216_v38 = vadd.f32 %v1665_v36, %v1215_v37 }
 0x5e7   : > { %1635 = vmatpush.xpose.msk.msrb.mxu0 %vm677_vm5, %v1216_v38 }
 0x654   : > { %v1087_v39 = vpop.xlane.xlu0 %1086 }
 0x655   : > { %v1088_v40 = vsub.f32 %v1084_v34, %v1087_v39 }
 0x657   : > { %v1089_v41 = vmul.f32 1.442695, %v1088_v40 }
 0x659   : > { %1684 = vpow2.f32 %v1089_v41  ;;  %v1390_v41 = vld [vmem:[%s2199_s13 + $0x18] sm:$0xff] }
 0x65f   : > { %v1685_v42 = vpop.eup %1684 }
 0x660   : > { %v1091_v43 = vsel %vm677_vm5, %v1685_v42, 0.0 }
 0x661   : > { %1092 = vadd.xlane.f32.xlu1 %v1091_v43  ;;  %v1387_v43 = vld [vmem:[%s2199_s13] sm:$0xff] }
 0x6d4   : > { %v1093_v49 = vpop.xlane.xlu1 %1092 }
 0x6d5   : > { %1686 = vrcp.f32 %v1093_v49  ;;  %v1105_v53 = vand.u32 2147483648, %v1093_v49  ;;  %v1103_v55 = vand.u32 2147483647, %v1093_v49  ;;  %vm1099_vm1 = vweird.f32 %v1093_v49 }
 0x6d7   : > { %v1106_v57 = vor.u32 1.1754944e-38, %v1105_v53  ;;  %vm1104_vm3 = vcmp.eq.f32.partialorder %v1103_v55, 8.507059e+37 }
 0x6db   : > { %v1687_v50 = vpop.eup %1686 }
 0x6dc   : > { %v1095_v51 = vmul.f32 %v1687_v50, %v1093_v49  ;;  %vm1100_vm15 = vweird.f32 %v1687_v50 }
 0x6dd   : > { %vm1101_vm2 = vmor %vm1099_vm1, %vm1100_vm15 }
 0x6de   : > { %v1096_v52 = vsub.f32 1.0, %v1095_v51 }
 0x6e0   : > { %v1097_v54 = vmul.f32 %v1687_v50, %v1096_v52 }
 0x6e2   : > { %v1098_v56 = vadd.f32 %v1687_v50, %v1097_v54  ;;  %v1668_v54 = vld [vmem:[%s2197_s11] ss:$0 sm:$0xff] }
 0x6e4   : > { %v1102_v58 = vsel %vm1101_vm2, %v1687_v50, %v1098_v56 }
 0x6e5   : > { %v1107_v59 = vsel %vm1104_vm3, %v1106_v57, %v1102_v58 }
 0x6e6   : > { %v1108_v60 = vmul.f32 %v1685_v42, %v1107_v59  ;;  %v1388_v42 = vld [vmem:[%s2199_s13 + $0x8] sm:$0xff]  ;;  %v1477_v59 = vld [vmem:[%s2201_s15 + $0x78] sm:$0xff] }
 0x6e8   : > { %1614 = vmatmul.msk.f32.vlgmr.msra.gmra.mxu3 %vm677_vm5, %v1108_v60  ;;  %v1476_v60 = vld [vmem:[%s2201_s15 + $0x70] sm:$0xff] }
 0x6e9   : > { %1410 = vmatpush.msra.mxu3 %v1390_v41 }
 0x6f0   : > { %1634 = vmatmul.msk.f32.vlgmr.msrb.gmra.mxu3 %vm547_vm0, %v1875_v44 }
 0x76b   : > { %v1129_v61 = vpop.f32.mrf.mxu3 }
 0x76c   : > { %1616 = vmatmul.msk.f32.vlgmr.msra.gmra.mxu0 %vm677_vm5, %v1129_v61  ;;  %v1475_v61 = vld [vmem:[%s2201_s15 + $0x68] sm:$0xff] }
 0x76d   : > { %1482 = vmatpush.msra.mxu0 %v1477_v59 }
 0x76f   : > { %1483 = vmatpush.msra.mxu0 %v1476_v60 }
 0x771   : > { %1484 = vmatpush.msra.mxu0 %v1475_v61 }
 0x773   : > { %v1245_v3 = vpop.f32.mrf.mxu3  ;;  %1485 = vmatpush.msra.mxu0 %v1474_v63 }
 0x774   : > { %v1246_v4 = vadd.f32 %v1666_v1, %v1245_v3  ;;  %1636 = vmatmul.msk.f32.vlgmr.msrb.gmra.mxu0 %vm677_vm5, %v1186_v2  ;;  %v1473_v1 = vld [vmem:[%s2201_s15 + $0x58] sm:$0xff] }
 0x775   : > { %1486 = vmatpush.msra.mxu0 %v1473_v1 }
 0x776   : > { %1318 = vmatpush.msra.mxu1 %v1246_v4  ;;  %v1472_v4 = vld [vmem:[%s2201_s15 + $0x50] sm:$0xff] }
 0x777   : > { %1487 = vmatpush.msra.mxu0 %v1472_v4 }
 0x7e9   : > { %v1154_v5 = vpop.f32.mrf.mxu0 }
 0x7ea   : > { %v1157_v44 = vadd.f32 %v1154_v5, %v965_v28 }
 0x7f1   : > { %v1271_v6 = vpop.f32.mrf.mxu0 }
 0x7f2   : > { %v1274_v10 = vmul.f32 0.35355338, %v1271_v6 }
 0x7f4   : > { %v1275_v11 = vsel %vm589_vm6, %v1274_v10, -1e+30  ;;  %v1470_v10 = vld [vmem:[%s2201_s15 + $0x40] sm:$0xff] }
 0x7f5   : > { %v1276_v12 = vsel %vm677_vm5, %v1275_v11, -inf }
 0x7f6   : > { %1277 = vmax.xlane.f32.xlu2 %v1276_v12  ;;  %v1469_v12 = vld [vmem:[%s2201_s15 + $0x38] sm:$0xff] }
 0x869   : > { %v1278_v13 = vpop.xlane.xlu2 %1277 }
 0x86a   : > { %v1279_v14 = vsub.f32 %v1275_v11, %v1278_v13 }
 0x86c   : > { %v1280_v15 = vmul.f32 1.442695, %v1279_v14 }
 0x86e   : > { %1688 = vpow2.f32 %v1280_v15  ;;  %v1468_v15 = vld [vmem:[%s2201_s15 + $0x30] sm:$0xff] }
 0x874   : > { %v1689_v16 = vpop.eup %1688 }
 0x875   : > { %v1282_v17 = vsel %vm677_vm5, %v1689_v16, 0.0 }
 0x876   : > { %1283 = vadd.xlane.f32.xlu0 %v1282_v17 }
 0x8e9   : > { %v1284_v19 = vpop.xlane.xlu0 %1283 }
 0x8ea   : > { %1690 = vrcp.f32 %v1284_v19  ;;  %v1296_v21 = vand.u32 2147483648, %v1284_v19  ;;  %v1294_v23 = vand.u32 2147483647, %v1284_v19  ;;  %vm1290_vm6 = vweird.f32 %v1284_v19 }
 0x8ec   : > { %v1297_v25 = vor.u32 1.1754944e-38, %v1296_v21  ;;  %vm1295_vm8 = vcmp.eq.f32.partialorder %v1294_v23, 8.507059e+37  ;;  %v1465_v21 = vld [vmem:[%s2201_s15 + $0x18] sm:$0xff] }
 0x8f0   : > { %v1691_v7 = vpop.eup %1690 }
 0x8f1   : > { %v1286_v9 = vmul.f32 %v1691_v7, %v1284_v19  ;;  %vm1291_vm4 = vweird.f32 %v1691_v7 }
 0x8f2   : > { %vm1292_vm7 = vmor %vm1290_vm6, %vm1291_vm4 }
 0x8f3   : > { %v1287_v20 = vsub.f32 1.0, %v1286_v9  ;;  %v1466_v9 = vld [vmem:[%s2201_s15 + $0x20] sm:$0xff] }
 0x8f5   : > { %v1288_v22 = vmul.f32 %v1691_v7, %v1287_v20 }
 0x8f7   : > { %v1289_v24 = vadd.f32 %v1691_v7, %v1288_v22 }
 0x8f9   : > { %v1293_v26 = vsel %vm1292_vm7, %v1691_v7, %v1289_v24  ;;  %v1464_v24 = vld [vmem:[%s2201_s15 + $0x10] sm:$0xff] }
 0x8fa   : > { %v1298_v27 = vsel %vm1295_vm8, %v1297_v25, %v1293_v26  ;;  %v1463_v26 = vld [vmem:[%s2201_s15 + $0x8] sm:$0xff] }
 0x8fb   : > { %v1299_v28 = vmul.f32 %v1689_v16, %v1298_v27 }
 0x8fd   : > { %1637 = vmatmul.msk.f32.vlgmr.msra.gmra.mxu1 %vm677_vm5, %v1299_v28  ;;  %v1462_v28 = vld [vmem:[%s2201_s15] sm:$0xff] }
 0x97a   : > { %v1320_v29 = vpop.f32.mrf.mxu1 }
 0x97b   : > { %1639 = vmatmul.msk.f32.vlgmr.msra.gmra.mxu2 %vm677_vm5, %v1320_v29 }
 0x9fe   : > { %v1345_v30 = vpop.f32.mrf.mxu2 }
 0x9ff   : > { %v1348_v31 = vadd.f32 %v1345_v30, %v1157_v44  ;;  %v1471_v44 = vld [vmem:[%s2201_s15 + $0x48] sm:$0xff] }
 0xa00   : > { %1488 = vmatpush.msra.mxu0 %v1471_v44 }
 0xa01   : > { %v1349_v33 = vadd.f32 %v1348_v31, %v1811_v0  ;;  %v1389_v0 = vld [vmem:[%s2199_s13 + $0x10] sm:$0xff] }
 0xa02   : > { %1411 = vmatpush.msra.mxu3 %v1389_v0  ;;  %1489 = vmatpush.msra.mxu0 %v1470_v10 }
 0xa03   : > { %v2091_v34 = vadd.f32 %v1667_v32, %v1349_v33 }
 0xa04   : > { %1412 = vmatpush.msra.mxu3 %v1388_v42  ;;  %1490 = vmatpush.msra.mxu0 %v1469_v12 }
 0xa05   : > { %v1357_v35 = vsel %vm547_vm0, %v2091_v34, 0.0 }
 0xa06   : > { %1358 = vadd.xlane.f32.xlu1 %v1357_v35  ;;  %1413 = vmatpush.msra.mxu3 %v1387_v43 }
 0xa07   : > { %1491 = vmatpush.msra.mxu0 %v1468_v15 }
 0xa09   : > { %1492 = vmatpush.msra.mxu0 %v1467_v18 }
 0xa0b   : > { %1493 = vmatpush.msra.mxu0 %v1466_v9 }
 0xa0d   : > { %1494 = vmatpush.msra.mxu0 %v1465_v21 }
 0xa0f   : > { %1495 = vmatpush.msra.mxu0 %v1464_v24 }
 0xa11   : > { %1496 = vmatpush.msra.mxu0 %v1463_v26 }
 0xa13   : > { %1497 = vmatpush.msra.mxu0 %v1462_v28 }
 0xa79   : > { %v1359_v36 = vpop.xlane.xlu1 %1358 }
 0xa7a   : > { %v1360_v37 = vmul.f32 %v1359_v36, %v1815_v8 }
 0xa7c   : > { %v1361_v38 = vsub.f32 %v2091_v34, %v1360_v37 }
 0xa7e   : > { %v1362_v39 = vmul.f32 %v1361_v38, %v1361_v38 }
 0xa80   : > { %v1363_v40 = vsel %vm547_vm0, %v1362_v39, 0.0 }
 0xa81   : > { %1364 = vadd.xlane.f32.xlu2 %v1363_v40 }
 0xaf4   : > { %v1365_v45 = vpop.xlane.xlu2 %1364 }
 0xaf5   : > { %v1366_v46 = vmul.f32 %v1365_v45, %v1815_v8  ;;  %v1669_v8 = vld [vmem:[%s2198_s12] ss:$0 sm:$0xff] }
 0xaf7   : > { %v1367_v47 = vadd.f32 1e-05, %v1366_v46 }
 0xaf9   : > { %1692 = vrsqrt.f32 %v1367_v47  ;;  %vm1374_vm9 = vweird.f32 %v1367_v47 }
 0xaff   : > { %v1693_v48 = vpop.eup %1692 }
 0xb00   : > { %v1369_v49 = vmul.f32 %v1693_v48, %v1367_v47  ;;  %vm1375_vm5 = vweird.f32 %v1693_v48 }
 0xb01   : > { %vm1376_vm10 = vmor %vm1374_vm9, %vm1375_vm5 }
 0xb02   : > { %v1370_v50 = vmul.f32 %v1693_v48, %v1369_v49 }
 0xb04   : > { %v1371_v51 = vmul.f32 0.5, %v1370_v50 }
 0xb06   : > { %v1372_v52 = vsub.f32 1.5, %v1371_v51 }
 0xb08   : > { %v1373_v53 = vmul.f32 %v1693_v48, %v1372_v52 }
 0xb0a   : > { %v1377_v55 = vsel %vm1376_vm10, %v1693_v48, %v1373_v53 }
 0xb0b   : > { %v1378_v56 = vmul.f32 %v1377_v55, %v1361_v38  ;;  %v1671_v55 = vld [vmem:[%s2202_s16] ss:$0 sm:$0xff] }
 0xb0d   : > { %v1382_v57 = vmul.f32 %v1668_v54, %v1378_v56 }
 0xb0f   : > { %v1386_v58 = vadd.f32 %v1669_v8, %v1382_v57 }
 0xb11   : > { %1640 = vmatmul.msk.f32.vlgmr.msra.gmra.mxu3 %vm547_vm0, %v1386_v58 }
 0xb94   : > { %v1415_v2 = vpop.f32.mrf.mxu3 }
 0xb95   : > { %v2136_v3 = vadd.f32 %v1670_v62, %v1415_v2 }
 0xb97   : > { %v1419_v5 = vmul.f32 0.70710677, %v2136_v3  ;;  %v1418_v52 = vmul.f32 0.5, %v2136_v3 }
 0xb99   : > { %v1420_v6 = vmul.f32 %v1419_v5, %v1419_v5 }
 0xb9b   : > { %v1421_v11 = vmin.f32 %v1420_v6, 16.0 }
 0xb9d   : > { %v1422_v13 = vmul.f32 2.1237322e-06, %v1421_v11  ;;  %v1433_v14 = vmul.f32 3.8918573e-05, %v1421_v11 }
 0xb9f   : > { %v1423_v16 = vadd.f32 0.00028619796, %v1422_v13  ;;  %v1434_v17 = vadd.f32 0.001143296, %v1433_v14 }
 0xba1   : > { %v1424_v19 = vmul.f32 %v1423_v16, %v1421_v11  ;;  %v1435_v7 = vmul.f32 %v1434_v17, %v1421_v11 }
 0xba3   : > { %v1436_v20 = vadd.f32 0.014752088, %v1435_v7  ;;  %v1425_v22 = vadd.f32 0.0036580483, %v1424_v19 }
 0xba5   : > { %v1437_v23 = vmul.f32 %v1436_v20, %v1421_v11  ;;  %v1426_v27 = vmul.f32 %v1425_v22, %v1421_v11 }
 0xba7   : > { %v1438_v25 = vadd.f32 0.112945676, %v1437_v23  ;;  %v1427_v31 = vadd.f32 0.05243302, %v1426_v27 }
 0xba9   : > { %v1439_v29 = vmul.f32 %v1438_v25, %v1421_v11  ;;  %v1428_v35 = vmul.f32 %v1427_v31, %v1421_v11 }
 0xbab   : > { %v1440_v30 = vadd.f32 0.4994258, %v1439_v29  ;;  %v1429_v36 = vadd.f32 0.18741608, %v1428_v35 }
 0xbad   : > { %v1441_v32 = vmul.f32 %v1440_v30, %v1421_v11  ;;  %v1430_v38 = vmul.f32 %v1429_v36, %v1421_v11 }
 0xbaf   : > { %v1442_v33 = vadd.f32 1.0, %v1441_v32  ;;  %v1431_v0 = vadd.f32 1.1283791, %v1430_v38 }
 0xbb1   : > { %1694 = vrcp.f32 %v1442_v33  ;;  %v1454_v41 = vand.u32 2147483648, %v1442_v33  ;;  %v1452_v43 = vand.u32 2147483647, %v1442_v33  ;;  %vm1448_vm12 = vweird.f32 %v1442_v33 }
 0xbb2   : > { %v1432_v47 = vmul.f32 %v1431_v0, %v1419_v5 }
 0xbb3   : > { %v1455_v46 = vor.u32 1.1754944e-38, %v1454_v41  ;;  %vm1453_vm14 = vcmp.eq.f32.partialorder %v1452_v43, 8.507059e+37 }
 0xbb7   : > { %v1695_v37 = vpop.eup %1694 }
 0xbb8   : > { %v1444_v39 = vmul.f32 %v1695_v37, %v1442_v33  ;;  %vm1449_vm11 = vweird.f32 %v1695_v37 }
 0xbb9   : > { %vm1450_vm13 = vmor %vm1448_vm12, %vm1449_vm11 }
 0xbba   : > { %v1445_v40 = vsub.f32 1.0, %v1444_v39 }
 0xbbc   : > { %v1446_v42 = vmul.f32 %v1695_v37, %v1445_v40 }
 0xbbe   : > { %v1447_v45 = vadd.f32 %v1695_v37, %v1446_v42 }
 0xbc0   : > { %v1451_v48 = vsel %vm1450_vm13, %v1695_v37, %v1447_v45 }
 0xbc1   : > { %v1456_v49 = vsel %vm1453_vm14, %v1455_v46, %v1451_v48 }
 0xbc2   : > { %v1457_v50 = vmul.f32 %v1456_v49, %v1432_v47 }
 0xbc4   : > { %v1641_v51 = vclamps-f32 %v1457_v50, 1.0 }
 0xbc6   : > { %v1460_v53 = vadd.f32 1.0, %v1641_v51 }
 0xbc8   : > { %v1461_v54 = vmul.f32 %v1460_v53, %v1418_v52 }
 0xbca   : > { %1498 = vmatmul.f32.vlgmr.msra.gmra.mxu0 %v1461_v54 }
 0xc47   : > { %v1499_v56 = vpop.f32.mrf.mxu0 }
 0xc48   : > { %v1500_v8 = vadd.f32 %v1671_v55, %v1499_v56 }
 0xc4a   : > { %v1502_v57 = vadd.f32 %v1500_v8, %v2091_v34 }
 0xc4c   : > { %1503 = vst.msk [vmem:[%s543_s21] sm:$0xff] %vm547_vm0, %v1502_v57 }
 0xc4d PF: > { %s27_s24 = sadd.s32 1, %s1702_s24  }
 0xc4e   : > { %p24_p4 = scmp.ge.s32.totalorder %s27_s24, 4  }
 0xc50   :  { %26 = sbr.rel (!%p24_p4) target bundleno = 3 (0x3), region = 139 }

</bundles_post_ra>
